<compile_context>
chip_gen: v5e
topology: v5e:2x2
jax: 0.10.0
libtpu: 0.0.40
codegen_flags: <defaults>
</compile_context>

<pallas_src>
import jax
import jax.numpy as jnp
from jax import lax
from jax.experimental import pallas as pl
from jax.experimental.pallas import tpu as pltpu


# ----------------------------- Pallas kernel ------------------------------ #

def lstm_ae_kernel(x_ref,               # (T, B, I)   float32
                   wih_e_ref,           # (I, 4H)
                   whh_e_ref,           # (H, 4H)
                   b_e_ref,             # (1, 4H)     (b_ih + b_hh, encoder)
                   wih_d_ref,           # (H, 4H)
                   whh_d_ref,           # (H, 4H)
                   b_d_ref,             # (1, 4H)     (b_ih + b_hh, decoder)
                   wout_ref,            # (H, 1)
                   bout_ref,            # (1, 1)
                   out_ref,             # (T, B, 1)
                   pre_ref,             # VMEM scratch (T, B, 4H): hoisted X @ Wih_e + b_e
                   hdec_ref):           # VMEM scratch (T, B, H) : decoder hidden states
    T, B, I = x_ref.shape
    H = whh_e_ref.shape[0]

    whh_e = whh_e_ref[...]
    whh_d = whh_d_ref[...]

    # ---- hoisted encoder input projection: one (T*B, I) @ (I, 4H) matmul ---- #
    x_flat = x_ref[...].reshape(T * B, I)
    pre = (jnp.dot(x_flat, wih_e_ref[...], preferred_element_type=jnp.float32)
           + b_e_ref[...])                                   # bias folded in once
    pre_ref[...] = pre.reshape(T, B, 4 * H)

    def lstm_step(gates, c):
        # 2 full-width EUP pushes instead of 4 quarter-width ones.
        sig = jax.nn.sigmoid(gates)                          # (B, 4H)
        th = jnp.tanh(gates)                                 # (B, 4H)
        i = sig[:, 0 * H:1 * H]
        f = sig[:, 1 * H:2 * H]
        g = th[:, 2 * H:3 * H]
        o = sig[:, 3 * H:4 * H]
        c_new = f * c + i * g
        h_new = o * jnp.tanh(c_new)
        return h_new, c_new

    h0 = jnp.zeros((B, H), jnp.float32)
    c0 = jnp.zeros((B, H), jnp.float32)

    # ------------------- encoder LSTM recurrence (serial in T) -------------- #
    def enc_body(t, carry):
        h, c = carry
        gates = pre_ref[t] + jnp.dot(h, whh_e, preferred_element_type=jnp.float32)
        return lstm_step(gates, c)

    h_enc, _ = lax.fori_loop(0, T, enc_body, (h0, c0), unroll=True)   # (B, H)

    # Decoder input at every timestep is the (constant) repeated encoder hidden
    # state, so its input projection + bias is hoisted out of the time loop.
    dec_in = (jnp.dot(h_enc, wih_d_ref[...], preferred_element_type=jnp.float32)
              + b_d_ref[...])                                # (B, 4H)

    # ------------------- decoder LSTM recurrence (serial in T) -------------- #
    def dec_body(t, carry):
        h, c = carry
        gates = dec_in + jnp.dot(h, whh_d, preferred_element_type=jnp.float32)
        h_new, c_new = lstm_step(gates, c)
        hdec_ref[t] = h_new                                  # defer output proj
        return (h_new, c_new)

    lax.fori_loop(0, T, dec_body, (h0, c0), unroll=True)

    # ---- deferred output projection: one (T*B, H) @ (H, 1) matmul + 1 store -- #
    h_all = hdec_ref[...].reshape(T * B, H)
    y = (jnp.dot(h_all, wout_ref[...], preferred_element_type=jnp.float32)
         + bout_ref[0, 0])                                   # (T*B, 1)
    out_ref[...] = y.reshape(T, B, 1).astype(out_ref.dtype)


# ------------------------------ wrapper ----------------------------------- #

def lstm_autoencoder_forward(x, params, *, batch_size, seq_size, input_size):
    """Mirrors LSTM_Autoencoder.forward: returns x_hat.squeeze() of shape (B, T)."""
    x = x.reshape(batch_size, seq_size, input_size).astype(jnp.float32)
    x_tm = jnp.transpose(x, (1, 0, 2))                       # time-major (T, B, I)

    H = params["whh_enc"].shape[0]
    full = lambda shape: pl.BlockSpec(shape, lambda i: (0,) * len(shape))

    out_tm = pl.pallas_call(
        lstm_ae_kernel,
        out_shape=jax.ShapeDtypeStruct((seq_size, batch_size, 1), jnp.float32),
        grid=(1,),
        in_specs=[
            full((seq_size, batch_size, input_size)),        # x
            full((input_size, 4 * H)),                       # wih_enc
            full((H, 4 * H)),                                # whh_enc
            full((1, 4 * H)),                                # b_enc
            full((H, 4 * H)),                                # wih_dec
            full((H, 4 * H)),                                # whh_dec
            full((1, 4 * H)),                                # b_dec
            full((H, 1)),                                    # w_out
            full((1, 1)),                                    # b_out
        ],
        out_specs=full((seq_size, batch_size, 1)),
        scratch_shapes=[
            pltpu.VMEM((seq_size, batch_size, 4 * H), jnp.float32),  # hoisted X @ Wih_e
            pltpu.VMEM((seq_size, batch_size, H), jnp.float32),      # decoder hiddens
        ],
        compiler_params=pltpu.CompilerParams(
            dimension_semantics=("arbitrary",)),
    )(x_tm,
      params["wih_enc"], params["whh_enc"], params["b_enc"],
      params["wih_dec"], params["whh_dec"], params["b_dec"],
      params["w_out"], params["b_out"])

    # cheap (B, T) squeeze+transpose of 64 elements outside the kernel (avoids
    # an in-kernel sub-vreg relayout). TODO(synk): emit (B, T) directly if a
    # lane-dense output layout ever matters at larger T.
    return jnp.transpose(out_tm[..., 0], (1, 0))             # (B, T)


# -------------------------- pure-JAX reference ----------------------------- #

def _lstm_cell_ref(x_t, h, c, wih, whh, b, H):
    gates = x_t @ wih + h @ whh + b
    i = jax.nn.sigmoid(gates[:, 0 * H:1 * H])
    f = jax.nn.sigmoid(gates[:, 1 * H:2 * H])
    g = jnp.tanh(gates[:, 2 * H:3 * H])
    o = jax.nn.sigmoid(gates[:, 3 * H:4 * H])
    c = f * c + i * g
    h = o * jnp.tanh(c)
    return h, c


def reference_forward(x, params, *, batch_size, seq_size, input_size):
    x = x.reshape(batch_size, seq_size, input_size).astype(jnp.float32)
    H = params["whh_enc"].shape[0]
    h = jnp.zeros((batch_size, H), jnp.float32)
    c = jnp.zeros((batch_size, H), jnp.float32)
    for t in range(seq_size):
        h, c = _lstm_cell_ref(x[:, t, :], h, c,
                              params["wih_enc"], params["whh_enc"],
                              params["b_enc"], H)
    h_enc = h
    hd = jnp.zeros((batch_size, H), jnp.float32)
    cd = jnp.zeros((batch_size, H), jnp.float32)
    outs = []
    for _ in range(seq_size):
        hd, cd = _lstm_cell_ref(h_enc, hd, cd,
                                params["wih_dec"], params["whh_dec"],
                                params["b_dec"], H)
        outs.append(hd @ params["w_out"] + params["b_out"])   # (B, 1)
    return jnp.concatenate(outs, axis=1)                      # (B, T)


# --------------------------------- main ------------------------------------ #

def init_params(key, input_size, hidden):
    ks = jax.random.split(key, 9)
    s = 1.0 / jnp.sqrt(hidden)
    u = lambda k, shape: jax.random.uniform(k, shape, jnp.float32, -s, s)
    return {
        "wih_enc": u(ks[0], (input_size, 4 * hidden)),
        "whh_enc": u(ks[1], (hidden, 4 * hidden)),
        "b_enc":   u(ks[2], (1, 4 * hidden)),
        "wih_dec": u(ks[3], (hidden, 4 * hidden)),
        "whh_dec": u(ks[4], (hidden, 4 * hidden)),
        "b_dec":   u(ks[5], (1, 4 * hidden)),
        "w_out":   u(ks[6], (hidden, 1)),
        "b_out":   u(ks[7], (1, 1)),
    }


if __name__ == "__main__":
    BATCH, SEQ, INPUT, HIDDEN = 8, 8, 4, 32   # 4*HIDDEN = 128 -> lane aligned

    key = jax.random.PRNGKey(0)
    kx, kp = jax.random.split(key)
    x = jax.random.normal(kx, (BATCH, SEQ, INPUT), jnp.float32)
    params = init_params(kp, INPUT, HIDDEN)

    y = lstm_autoencoder_forward(x, params, batch_size=BATCH,
                                 seq_size=SEQ, input_size=INPUT)
    y = jax.block_until_ready(y)

    y_ref = reference_forward(x, params, batch_size=BATCH,
                              seq_size=SEQ, input_size=INPUT)
    assert y.shape == (BATCH, SEQ)
    assert jnp.max(jnp.abs(y - y_ref)) < 1e-3, "mismatch vs pure-JAX reference"

    print("KERNEL_OK")
</pallas_src>

<mosaic_0001>
module attributes {stable_mosaic.version = 11 : i64} {
  func.func @lstm_ae_kernel(%arg0: i32, %arg1: memref<8x8x4xf32, #tpu.memory_space<vmem>>, %arg2: memref<4x128xf32, #tpu.memory_space<vmem>>, %arg3: memref<32x128xf32, #tpu.memory_space<vmem>>, %arg4: memref<1x128xf32, #tpu.memory_space<vmem>>, %arg5: memref<32x128xf32, #tpu.memory_space<vmem>>, %arg6: memref<32x128xf32, #tpu.memory_space<vmem>>, %arg7: memref<1x128xf32, #tpu.memory_space<vmem>>, %arg8: memref<32x1xf32, #tpu.memory_space<vmem>>, %arg9: memref<1x1xf32, #tpu.memory_space<vmem>>, %arg10: memref<8x8x1xf32, #tpu.memory_space<vmem>>, %arg11: memref<8x8x128xf32, #tpu.memory_space<vmem>>, %arg12: memref<8x8x32xf32, #tpu.memory_space<vmem>>) attributes {dimension_semantics = [#tpu.dimension_semantics<arbitrary>], iteration_bounds = array<i64: 1>, scalar_prefetch = 0 : i64, scratch_operands = 2 : i64, tpu.core_type = #tpu.core_type<tc>, window_params = [{pipeline_mode = #tpu.pipeline_mode<synchronous>, transform_indices = @transform_0, window_bounds = array<i64: 8, 8, 4>}, {pipeline_mode = #tpu.pipeline_mode<synchronous>, transform_indices = @transform_1, window_bounds = array<i64: 4, 128>}, {pipeline_mode = #tpu.pipeline_mode<synchronous>, transform_indices = @transform_2, window_bounds = array<i64: 32, 128>}, {pipeline_mode = #tpu.pipeline_mode<synchronous>, transform_indices = @transform_3, window_bounds = array<i64: 1, 128>}, {pipeline_mode = #tpu.pipeline_mode<synchronous>, transform_indices = @transform_4, window_bounds = array<i64: 32, 128>}, {pipeline_mode = #tpu.pipeline_mode<synchronous>, transform_indices = @transform_5, window_bounds = array<i64: 32, 128>}, {pipeline_mode = #tpu.pipeline_mode<synchronous>, transform_indices = @transform_6, window_bounds = array<i64: 1, 128>}, {pipeline_mode = #tpu.pipeline_mode<synchronous>, transform_indices = @transform_7, window_bounds = array<i64: 32, 1>}, {pipeline_mode = #tpu.pipeline_mode<synchronous>, transform_indices = @transform_8, window_bounds = array<i64: 1, 1>}, {pipeline_mode = #tpu.pipeline_mode<synchronous>, transform_indices = @transform_9, window_bounds = array<i64: 8, 8, 1>}]} {
    %c0 = arith.constant 0 : index
    %c0_0 = arith.constant 0 : index
    %0 = vector.load %arg3[%c0, %c0_0] : memref<32x128xf32, #tpu.memory_space<vmem>>, vector<32x128xf32>
    %c0_1 = arith.constant 0 : index
    %c0_2 = arith.constant 0 : index
    %1 = vector.load %arg6[%c0_1, %c0_2] : memref<32x128xf32, #tpu.memory_space<vmem>>, vector<32x128xf32>
    %c0_3 = arith.constant 0 : index
    %c0_4 = arith.constant 0 : index
    %c0_5 = arith.constant 0 : index
    %2 = vector.load %arg1[%c0_3, %c0_4, %c0_5] : memref<8x8x4xf32, #tpu.memory_space<vmem>>, vector<8x8x4xf32>
    %3 = vector.shape_cast %2 : vector<8x8x4xf32> to vector<64x4xf32>
    %c0_6 = arith.constant 0 : index
    %c0_7 = arith.constant 0 : index
    %4 = vector.load %arg2[%c0_6, %c0_7] : memref<4x128xf32, #tpu.memory_space<vmem>>, vector<4x128xf32>
    %cst = arith.constant dense<0.000000e+00> : vector<64x128xf32>
    %5 = tpu.matmul %3, %4, %cst {dimension_numbers = #tpu.dot_dimension_numbers<[1], [0], [0], [1], [0, 0, 1, 1], [], []>} : vector<64x4xf32>, vector<4x128xf32>, vector<64x128xf32> -> vector<64x128xf32>
    %c0_8 = arith.constant 0 : index
    %c0_9 = arith.constant 0 : index
    %6 = vector.load %arg4[%c0_8, %c0_9] : memref<1x128xf32, #tpu.memory_space<vmem>>, vector<1x128xf32>
    %7 = vector.broadcast %6 : vector<1x128xf32> to vector<64x128xf32>
    %8 = arith.addf %5, %7 : vector<64x128xf32>
    %9 = vector.shape_cast %8 : vector<64x128xf32> to vector<8x8x128xf32>
    %c0_10 = arith.constant 0 : index
    %c0_11 = arith.constant 0 : index
    %c0_12 = arith.constant 0 : index
    %10 = vector.load %arg11[%c0_10, %c0_11, %c0_12] : memref<8x8x128xf32, #tpu.memory_space<vmem>>, vector<8x8x128xf32>
    tpu.vector_store %arg11[%c0_10, %c0_11, %c0_12], %9 {strides = array<i32>} : memref<8x8x128xf32, #tpu.memory_space<vmem>>, vector<8x8x128xf32>,
    %cst_13 = arith.constant 0.000000e+00 : f32
    %11 = vector.broadcast %cst_13 : f32 to vector<8x32xf32>
    %cst_14 = arith.constant 0.000000e+00 : f32
    %12 = vector.broadcast %cst_14 : f32 to vector<8x32xf32>
    %c0_i32 = arith.constant 0 : i32
    %13 = arith.index_cast %c0_i32 : i32 to index
    %c0_15 = arith.constant 0 : index
    %c0_16 = arith.constant 0 : index
    %14 = vector.load %arg11[%13, %c0_15, %c0_16] : memref<8x8x128xf32, #tpu.memory_space<vmem>>, vector<1x8x128xf32>
    %15 = vector.shape_cast %14 : vector<1x8x128xf32> to vector<8x128xf32>
    %cst_17 = arith.constant dense<0.000000e+00> : vector<8x128xf32>
    %16 = tpu.matmul %11, %0, %cst_17 {dimension_numbers = #tpu.dot_dimension_numbers<[1], [0], [0], [1], [0, 0, 1, 1], [], []>} : vector<8x32xf32>, vector<32x128xf32>, vector<8x128xf32> -> vector<8x128xf32>
    %17 = arith.addf %15, %16 : vector<8x128xf32>
    %18 = arith.negf %17 : vector<8x128xf32>
    %19 = math.exp %18 : vector<8x128xf32>
    %cst_18 = arith.constant 1.000000e+00 : f32
    %20 = vector.broadcast %cst_18 : f32 to vector<8x128xf32>
    %21 = arith.addf %20, %19 : vector<8x128xf32>
    %22 = arith.divf %20, %21 : vector<8x128xf32>
    %23 = math.tanh %17 : vector<8x128xf32>
    %24 = vector.extract_strided_slice %22 {offsets = [0, 0], sizes = [8, 32], strides = [1, 1]} : vector<8x128xf32> to vector<8x32xf32>
    %25 = vector.extract_strided_slice %22 {offsets = [0, 32], sizes = [8, 32], strides = [1, 1]} : vector<8x128xf32> to vector<8x32xf32>
    %26 = vector.extract_strided_slice %23 {offsets = [0, 64], sizes = [8, 32], strides = [1, 1]} : vector<8x128xf32> to vector<8x32xf32>
    %27 = vector.extract_strided_slice %22 {offsets = [0, 96], sizes = [8, 32], strides = [1, 1]} : vector<8x128xf32> to vector<8x32xf32>
    %28 = arith.mulf %25, %12 : vector<8x32xf32>
    %29 = arith.mulf %24, %26 : vector<8x32xf32>
    %30 = arith.addf %28, %29 : vector<8x32xf32>
    %31 = math.tanh %30 : vector<8x32xf32>
    %32 = arith.mulf %27, %31 : vector<8x32xf32>
    %c1_i32 = arith.constant 1 : i32
    %33 = arith.index_cast %c1_i32 : i32 to index
    %c0_19 = arith.constant 0 : index
    %c0_20 = arith.constant 0 : index
    %34 = vector.load %arg11[%33, %c0_19, %c0_20] : memref<8x8x128xf32, #tpu.memory_space<vmem>>, vector<1x8x128xf32>
    %35 = vector.shape_cast %34 : vector<1x8x128xf32> to vector<8x128xf32>
    %cst_21 = arith.constant dense<0.000000e+00> : vector<8x128xf32>
    %36 = tpu.matmul %32, %0, %cst_21 {dimension_numbers = #tpu.dot_dimension_numbers<[1], [0], [0], [1], [0, 0, 1, 1], [], []>} : vector<8x32xf32>, vector<32x128xf32>, vector<8x128xf32> -> vector<8x128xf32>
    %37 = arith.addf %35, %36 : vector<8x128xf32>
    %38 = arith.negf %37 : vector<8x128xf32>
    %39 = math.exp %38 : vector<8x128xf32>
    %cst_22 = arith.constant 1.000000e+00 : f32
    %40 = vector.broadcast %cst_22 : f32 to vector<8x128xf32>
    %41 = arith.addf %40, %39 : vector<8x128xf32>
    %42 = arith.divf %40, %41 : vector<8x128xf32>
    %43 = math.tanh %37 : vector<8x128xf32>
    %44 = vector.extract_strided_slice %42 {offsets = [0, 0], sizes = [8, 32], strides = [1, 1]} : vector<8x128xf32> to vector<8x32xf32>
    %45 = vector.extract_strided_slice %42 {offsets = [0, 32], sizes = [8, 32], strides = [1, 1]} : vector<8x128xf32> to vector<8x32xf32>
    %46 = vector.extract_strided_slice %43 {offsets = [0, 64], sizes = [8, 32], strides = [1, 1]} : vector<8x128xf32> to vector<8x32xf32>
    %47 = vector.extract_strided_slice %42 {offsets = [0, 96], sizes = [8, 32], strides = [1, 1]} : vector<8x128xf32> to vector<8x32xf32>
    %48 = arith.mulf %45, %30 : vector<8x32xf32>
    %49 = arith.mulf %44, %46 : vector<8x32xf32>
    %50 = arith.addf %48, %49 : vector<8x32xf32>
    %51 = math.tanh %50 : vector<8x32xf32>
    %52 = arith.mulf %47, %51 : vector<8x32xf32>
    %c2_i32 = arith.constant 2 : i32
    %53 = arith.index_cast %c2_i32 : i32 to index
    %c0_23 = arith.constant 0 : index
    %c0_24 = arith.constant 0 : index
    %54 = vector.load %arg11[%53, %c0_23, %c0_24] : memref<8x8x128xf32, #tpu.memory_space<vmem>>, vector<1x8x128xf32>
    %55 = vector.shape_cast %54 : vector<1x8x128xf32> to vector<8x128xf32>
    %cst_25 = arith.constant dense<0.000000e+00> : vector<8x128xf32>
    %56 = tpu.matmul %52, %0, %cst_25 {dimension_numbers = #tpu.dot_dimension_numbers<[1], [0], [0], [1], [0, 0, 1, 1], [], []>} : vector<8x32xf32>, vector<32x128xf32>, vector<8x128xf32> -> vector<8x128xf32>
    %57 = arith.addf %55, %56 : vector<8x128xf32>
    %58 = arith.negf %57 : vector<8x128xf32>
    %59 = math.exp %58 : vector<8x128xf32>
    %cst_26 = arith.constant 1.000000e+00 : f32
    %60 = vector.broadcast %cst_26 : f32 to vector<8x128xf32>
    %61 = arith.addf %60, %59 : vector<8x128xf32>
    %62 = arith.divf %60, %61 : vector<8x128xf32>
    %63 = math.tanh %57 : vector<8x128xf32>
    %64 = vector.extract_strided_slice %62 {offsets = [0, 0], sizes = [8, 32], strides = [1, 1]} : vector<8x128xf32> to vector<8x32xf32>
    %65 = vector.extract_strided_slice %62 {offsets = [0, 32], sizes = [8, 32], strides = [1, 1]} : vector<8x128xf32> to vector<8x32xf32>
    %66 = vector.extract_strided_slice %63 {offsets = [0, 64], sizes = [8, 32], strides = [1, 1]} : vector<8x128xf32> to vector<8x32xf32>
    %67 = vector.extract_strided_slice %62 {offsets = [0, 96], sizes = [8, 32], strides = [1, 1]} : vector<8x128xf32> to vector<8x32xf32>
    %68 = arith.mulf %65, %50 : vector<8x32xf32>
    %69 = arith.mulf %64, %66 : vector<8x32xf32>
    %70 = arith.addf %68, %69 : vector<8x32xf32>
    %71 = math.tanh %70 : vector<8x32xf32>
    %72 = arith.mulf %67, %71 : vector<8x32xf32>
    %c3_i32 = arith.constant 3 : i32
    %73 = arith.index_cast %c3_i32 : i32 to index
    %c0_27 = arith.constant 0 : index
    %c0_28 = arith.constant 0 : index
    %74 = vector.load %arg11[%73, %c0_27, %c0_28] : memref<8x8x128xf32, #tpu.memory_space<vmem>>, vector<1x8x128xf32>
    %75 = vector.shape_cast %74 : vector<1x8x128xf32> to vector<8x128xf32>
    %cst_29 = arith.constant dense<0.000000e+00> : vector<8x128xf32>
    %76 = tpu.matmul %72, %0, %cst_29 {dimension_numbers = #tpu.dot_dimension_numbers<[1], [0], [0], [1], [0, 0, 1, 1], [], []>} : vector<8x32xf32>, vector<32x128xf32>, vector<8x128xf32> -> vector<8x128xf32>
    %77 = arith.addf %75, %76 : vector<8x128xf32>
    %78 = arith.negf %77 : vector<8x128xf32>
    %79 = math.exp %78 : vector<8x128xf32>
    %cst_30 = arith.constant 1.000000e+00 : f32
    %80 = vector.broadcast %cst_30 : f32 to vector<8x128xf32>
    %81 = arith.addf %80, %79 : vector<8x128xf32>
    %82 = arith.divf %80, %81 : vector<8x128xf32>
    %83 = math.tanh %77 : vector<8x128xf32>
    %84 = vector.extract_strided_slice %82 {offsets = [0, 0], sizes = [8, 32], strides = [1, 1]} : vector<8x128xf32> to vector<8x32xf32>
    %85 = vector.extract_strided_slice %82 {offsets = [0, 32], sizes = [8, 32], strides = [1, 1]} : vector<8x128xf32> to vector<8x32xf32>
    %86 = vector.extract_strided_slice %83 {offsets = [0, 64], sizes = [8, 32], strides = [1, 1]} : vector<8x128xf32> to vector<8x32xf32>
    %87 = vector.extract_strided_slice %82 {offsets = [0, 96], sizes = [8, 32], strides = [1, 1]} : vector<8x128xf32> to vector<8x32xf32>
    %88 = arith.mulf %85, %70 : vector<8x32xf32>
    %89 = arith.mulf %84, %86 : vector<8x32xf32>
    %90 = arith.addf %88, %89 : vector<8x32xf32>
    %91 = math.tanh %90 : vector<8x32xf32>
    %92 = arith.mulf %87, %91 : vector<8x32xf32>
    %c4_i32 = arith.constant 4 : i32
    %93 = arith.index_cast %c4_i32 : i32 to index
    %c0_31 = arith.constant 0 : index
    %c0_32 = arith.constant 0 : index
    %94 = vector.load %arg11[%93, %c0_31, %c0_32] : memref<8x8x128xf32, #tpu.memory_space<vmem>>, vector<1x8x128xf32>
    %95 = vector.shape_cast %94 : vector<1x8x128xf32> to vector<8x128xf32>
    %cst_33 = arith.constant dense<0.000000e+00> : vector<8x128xf32>
    %96 = tpu.matmul %92, %0, %cst_33 {dimension_numbers = #tpu.dot_dimension_numbers<[1], [0], [0], [1], [0, 0, 1, 1], [], []>} : vector<8x32xf32>, vector<32x128xf32>, vector<8x128xf32> -> vector<8x128xf32>
    %97 = arith.addf %95, %96 : vector<8x128xf32>
    %98 = arith.negf %97 : vector<8x128xf32>
    %99 = math.exp %98 : vector<8x128xf32>
    %cst_34 = arith.constant 1.000000e+00 : f32
    %100 = vector.broadcast %cst_34 : f32 to vector<8x128xf32>
    %101 = arith.addf %100, %99 : vector<8x128xf32>
    %102 = arith.divf %100, %101 : vector<8x128xf32>
    %103 = math.tanh %97 : vector<8x128xf32>
    %104 = vector.extract_strided_slice %102 {offsets = [0, 0], sizes = [8, 32], strides = [1, 1]} : vector<8x128xf32> to vector<8x32xf32>
    %105 = vector.extract_strided_slice %102 {offsets = [0, 32], sizes = [8, 32], strides = [1, 1]} : vector<8x128xf32> to vector<8x32xf32>
    %106 = vector.extract_strided_slice %103 {offsets = [0, 64], sizes = [8, 32], strides = [1, 1]} : vector<8x128xf32> to vector<8x32xf32>
    %107 = vector.extract_strided_slice %102 {offsets = [0, 96], sizes = [8, 32], strides = [1, 1]} : vector<8x128xf32> to vector<8x32xf32>
    %108 = arith.mulf %105, %90 : vector<8x32xf32>
    %109 = arith.mulf %104, %106 : vector<8x32xf32>
    %110 = arith.addf %108, %109 : vector<8x32xf32>
    %111 = math.tanh %110 : vector<8x32xf32>
    %112 = arith.mulf %107, %111 : vector<8x32xf32>
    %c5_i32 = arith.constant 5 : i32
    %113 = arith.index_cast %c5_i32 : i32 to index
    %c0_35 = arith.constant 0 : index
    %c0_36 = arith.constant 0 : index
    %114 = vector.load %arg11[%113, %c0_35, %c0_36] : memref<8x8x128xf32, #tpu.memory_space<vmem>>, vector<1x8x128xf32>
    %115 = vector.shape_cast %114 : vector<1x8x128xf32> to vector<8x128xf32>
    %cst_37 = arith.constant dense<0.000000e+00> : vector<8x128xf32>
    %116 = tpu.matmul %112, %0, %cst_37 {dimension_numbers = #tpu.dot_dimension_numbers<[1], [0], [0], [1], [0, 0, 1, 1], [], []>} : vector<8x32xf32>, vector<32x128xf32>, vector<8x128xf32> -> vector<8x128xf32>
    %117 = arith.addf %115, %116 : vector<8x128xf32>
    %118 = arith.negf %117 : vector<8x128xf32>
    %119 = math.exp %118 : vector<8x128xf32>
    %cst_38 = arith.constant 1.000000e+00 : f32
    %120 = vector.broadcast %cst_38 : f32 to vector<8x128xf32>
    %121 = arith.addf %120, %119 : vector<8x128xf32>
    %122 = arith.divf %120, %121 : vector<8x128xf32>
    %123 = math.tanh %117 : vector<8x128xf32>
    %124 = vector.extract_strided_slice %122 {offsets = [0, 0], sizes = [8, 32], strides = [1, 1]} : vector<8x128xf32> to vector<8x32xf32>
    %125 = vector.extract_strided_slice %122 {offsets = [0, 32], sizes = [8, 32], strides = [1, 1]} : vector<8x128xf32> to vector<8x32xf32>
    %126 = vector.extract_strided_slice %123 {offsets = [0, 64], sizes = [8, 32], strides = [1, 1]} : vector<8x128xf32> to vector<8x32xf32>
    %127 = vector.extract_strided_slice %122 {offsets = [0, 96], sizes = [8, 32], strides = [1, 1]} : vector<8x128xf32> to vector<8x32xf32>
    %128 = arith.mulf %125, %110 : vector<8x32xf32>
    %129 = arith.mulf %124, %126 : vector<8x32xf32>
    %130 = arith.addf %128, %129 : vector<8x32xf32>
    %131 = math.tanh %130 : vector<8x32xf32>
    %132 = arith.mulf %127, %131 : vector<8x32xf32>
    %c6_i32 = arith.constant 6 : i32
    %133 = arith.index_cast %c6_i32 : i32 to index
    %c0_39 = arith.constant 0 : index
    %c0_40 = arith.constant 0 : index
    %134 = vector.load %arg11[%133, %c0_39, %c0_40] : memref<8x8x128xf32, #tpu.memory_space<vmem>>, vector<1x8x128xf32>
    %135 = vector.shape_cast %134 : vector<1x8x128xf32> to vector<8x128xf32>
    %cst_41 = arith.constant dense<0.000000e+00> : vector<8x128xf32>
    %136 = tpu.matmul %132, %0, %cst_41 {dimension_numbers = #tpu.dot_dimension_numbers<[1], [0], [0], [1], [0, 0, 1, 1], [], []>} : vector<8x32xf32>, vector<32x128xf32>, vector<8x128xf32> -> vector<8x128xf32>
    %137 = arith.addf %135, %136 : vector<8x128xf32>
    %138 = arith.negf %137 : vector<8x128xf32>
    %139 = math.exp %138 : vector<8x128xf32>
    %cst_42 = arith.constant 1.000000e+00 : f32
    %140 = vector.broadcast %cst_42 : f32 to vector<8x128xf32>
    %141 = arith.addf %140, %139 : vector<8x128xf32>
    %142 = arith.divf %140, %141 : vector<8x128xf32>
    %143 = math.tanh %137 : vector<8x128xf32>
    %144 = vector.extract_strided_slice %142 {offsets = [0, 0], sizes = [8, 32], strides = [1, 1]} : vector<8x128xf32> to vector<8x32xf32>
    %145 = vector.extract_strided_slice %142 {offsets = [0, 32], sizes = [8, 32], strides = [1, 1]} : vector<8x128xf32> to vector<8x32xf32>
    %146 = vector.extract_strided_slice %143 {offsets = [0, 64], sizes = [8, 32], strides = [1, 1]} : vector<8x128xf32> to vector<8x32xf32>
    %147 = vector.extract_strided_slice %142 {offsets = [0, 96], sizes = [8, 32], strides = [1, 1]} : vector<8x128xf32> to vector<8x32xf32>
    %148 = arith.mulf %145, %130 : vector<8x32xf32>
    %149 = arith.mulf %144, %146 : vector<8x32xf32>
    %150 = arith.addf %148, %149 : vector<8x32xf32>
    %151 = math.tanh %150 : vector<8x32xf32>
    %152 = arith.mulf %147, %151 : vector<8x32xf32>
    %c7_i32 = arith.constant 7 : i32
    %153 = arith.index_cast %c7_i32 : i32 to index
    %c0_43 = arith.constant 0 : index
    %c0_44 = arith.constant 0 : index
    %154 = vector.load %arg11[%153, %c0_43, %c0_44] : memref<8x8x128xf32, #tpu.memory_space<vmem>>, vector<1x8x128xf32>
    %155 = vector.shape_cast %154 : vector<1x8x128xf32> to vector<8x128xf32>
    %cst_45 = arith.constant dense<0.000000e+00> : vector<8x128xf32>
    %156 = tpu.matmul %152, %0, %cst_45 {dimension_numbers = #tpu.dot_dimension_numbers<[1], [0], [0], [1], [0, 0, 1, 1], [], []>} : vector<8x32xf32>, vector<32x128xf32>, vector<8x128xf32> -> vector<8x128xf32>
    %157 = arith.addf %155, %156 : vector<8x128xf32>
    %158 = arith.negf %157 : vector<8x128xf32>
    %159 = math.exp %158 : vector<8x128xf32>
    %cst_46 = arith.constant 1.000000e+00 : f32
    %160 = vector.broadcast %cst_46 : f32 to vector<8x128xf32>
    %161 = arith.addf %160, %159 : vector<8x128xf32>
    %162 = arith.divf %160, %161 : vector<8x128xf32>
    %163 = math.tanh %157 : vector<8x128xf32>
    %164 = vector.extract_strided_slice %162 {offsets = [0, 0], sizes = [8, 32], strides = [1, 1]} : vector<8x128xf32> to vector<8x32xf32>
    %165 = vector.extract_strided_slice %162 {offsets = [0, 32], sizes = [8, 32], strides = [1, 1]} : vector<8x128xf32> to vector<8x32xf32>
    %166 = vector.extract_strided_slice %163 {offsets = [0, 64], sizes = [8, 32], strides = [1, 1]} : vector<8x128xf32> to vector<8x32xf32>
    %167 = vector.extract_strided_slice %162 {offsets = [0, 96], sizes = [8, 32], strides = [1, 1]} : vector<8x128xf32> to vector<8x32xf32>
    %168 = arith.mulf %165, %150 : vector<8x32xf32>
    %169 = arith.mulf %164, %166 : vector<8x32xf32>
    %170 = arith.addf %168, %169 : vector<8x32xf32>
    %171 = math.tanh %170 : vector<8x32xf32>
    %172 = arith.mulf %167, %171 : vector<8x32xf32>
    %c8_i32 = arith.constant 8 : i32
    %c0_47 = arith.constant 0 : index
    %c0_48 = arith.constant 0 : index
    %173 = vector.load %arg5[%c0_47, %c0_48] : memref<32x128xf32, #tpu.memory_space<vmem>>, vector<32x128xf32>
    %cst_49 = arith.constant dense<0.000000e+00> : vector<8x128xf32>
    %174 = tpu.matmul %172, %173, %cst_49 {dimension_numbers = #tpu.dot_dimension_numbers<[1], [0], [0], [1], [0, 0, 1, 1], [], []>} : vector<8x32xf32>, vector<32x128xf32>, vector<8x128xf32> -> vector<8x128xf32>
    %c0_50 = arith.constant 0 : index
    %c0_51 = arith.constant 0 : index
    %175 = vector.load %arg7[%c0_50, %c0_51] : memref<1x128xf32, #tpu.memory_space<vmem>>, vector<1x128xf32>
    %176 = vector.broadcast %175 : vector<1x128xf32> to vector<8x128xf32>
    %177 = arith.addf %174, %176 : vector<8x128xf32>
    %c0_i32_52 = arith.constant 0 : i32
    %cst_53 = arith.constant dense<0.000000e+00> : vector<8x128xf32>
    %178 = tpu.matmul %11, %1, %cst_53 {dimension_numbers = #tpu.dot_dimension_numbers<[1], [0], [0], [1], [0, 0, 1, 1], [], []>} : vector<8x32xf32>, vector<32x128xf32>, vector<8x128xf32> -> vector<8x128xf32>
    %179 = arith.addf %177, %178 : vector<8x128xf32>
    %180 = arith.negf %179 : vector<8x128xf32>
    %181 = math.exp %180 : vector<8x128xf32>
    %cst_54 = arith.constant 1.000000e+00 : f32
    %182 = vector.broadcast %cst_54 : f32 to vector<8x128xf32>
    %183 = arith.addf %182, %181 : vector<8x128xf32>
    %184 = arith.divf %182, %183 : vector<8x128xf32>
    %185 = math.tanh %179 : vector<8x128xf32>
    %186 = vector.extract_strided_slice %184 {offsets = [0, 0], sizes = [8, 32], strides = [1, 1]} : vector<8x128xf32> to vector<8x32xf32>
    %187 = vector.extract_strided_slice %184 {offsets = [0, 32], sizes = [8, 32], strides = [1, 1]} : vector<8x128xf32> to vector<8x32xf32>
    %188 = vector.extract_strided_slice %185 {offsets = [0, 64], sizes = [8, 32], strides = [1, 1]} : vector<8x128xf32> to vector<8x32xf32>
    %189 = vector.extract_strided_slice %184 {offsets = [0, 96], sizes = [8, 32], strides = [1, 1]} : vector<8x128xf32> to vector<8x32xf32>
    %190 = arith.mulf %187, %12 : vector<8x32xf32>
    %191 = arith.mulf %186, %188 : vector<8x32xf32>
    %192 = arith.addf %190, %191 : vector<8x32xf32>
    %193 = math.tanh %192 : vector<8x32xf32>
    %194 = arith.mulf %189, %193 : vector<8x32xf32>
    %195 = arith.index_cast %c0_i32_52 : i32 to index
    %c0_55 = arith.constant 0 : index
    %c0_56 = arith.constant 0 : index
    %196 = vector.load %arg12[%195, %c0_55, %c0_56] : memref<8x8x32xf32, #tpu.memory_space<vmem>>, vector<1x8x32xf32>
    %197 = vector.shape_cast %196 : vector<1x8x32xf32> to vector<8x32xf32>
    %198 = vector.shape_cast %194 : vector<8x32xf32> to vector<1x8x32xf32>
    tpu.vector_store %arg12[%195, %c0_55, %c0_56], %198 {strides = array<i32>} : memref<8x8x32xf32, #tpu.memory_space<vmem>>, vector<1x8x32xf32>,
    %c1_i32_57 = arith.constant 1 : i32
    %cst_58 = arith.constant dense<0.000000e+00> : vector<8x128xf32>
    %199 = tpu.matmul %194, %1, %cst_58 {dimension_numbers = #tpu.dot_dimension_numbers<[1], [0], [0], [1], [0, 0, 1, 1], [], []>} : vector<8x32xf32>, vector<32x128xf32>, vector<8x128xf32> -> vector<8x128xf32>
    %200 = arith.addf %177, %199 : vector<8x128xf32>
    %201 = arith.negf %200 : vector<8x128xf32>
    %202 = math.exp %201 : vector<8x128xf32>
    %cst_59 = arith.constant 1.000000e+00 : f32
    %203 = vector.broadcast %cst_59 : f32 to vector<8x128xf32>
    %204 = arith.addf %203, %202 : vector<8x128xf32>
    %205 = arith.divf %203, %204 : vector<8x128xf32>
    %206 = math.tanh %200 : vector<8x128xf32>
    %207 = vector.extract_strided_slice %205 {offsets = [0, 0], sizes = [8, 32], strides = [1, 1]} : vector<8x128xf32> to vector<8x32xf32>
    %208 = vector.extract_strided_slice %205 {offsets = [0, 32], sizes = [8, 32], strides = [1, 1]} : vector<8x128xf32> to vector<8x32xf32>
    %209 = vector.extract_strided_slice %206 {offsets = [0, 64], sizes = [8, 32], strides = [1, 1]} : vector<8x128xf32> to vector<8x32xf32>
    %210 = vector.extract_strided_slice %205 {offsets = [0, 96], sizes = [8, 32], strides = [1, 1]} : vector<8x128xf32> to vector<8x32xf32>
    %211 = arith.mulf %208, %192 : vector<8x32xf32>
    %212 = arith.mulf %207, %209 : vector<8x32xf32>
    %213 = arith.addf %211, %212 : vector<8x32xf32>
    %214 = math.tanh %213 : vector<8x32xf32>
    %215 = arith.mulf %210, %214 : vector<8x32xf32>
    %216 = arith.index_cast %c1_i32_57 : i32 to index
    %c0_60 = arith.constant 0 : index
    %c0_61 = arith.constant 0 : index
    %217 = vector.load %arg12[%216, %c0_60, %c0_61] : memref<8x8x32xf32, #tpu.memory_space<vmem>>, vector<1x8x32xf32>
    %218 = vector.shape_cast %217 : vector<1x8x32xf32> to vector<8x32xf32>
    %219 = vector.shape_cast %215 : vector<8x32xf32> to vector<1x8x32xf32>
    tpu.vector_store %arg12[%216, %c0_60, %c0_61], %219 {strides = array<i32>} : memref<8x8x32xf32, #tpu.memory_space<vmem>>, vector<1x8x32xf32>,
    %c2_i32_62 = arith.constant 2 : i32
    %cst_63 = arith.constant dense<0.000000e+00> : vector<8x128xf32>
    %220 = tpu.matmul %215, %1, %cst_63 {dimension_numbers = #tpu.dot_dimension_numbers<[1], [0], [0], [1], [0, 0, 1, 1], [], []>} : vector<8x32xf32>, vector<32x128xf32>, vector<8x128xf32> -> vector<8x128xf32>
    %221 = arith.addf %177, %220 : vector<8x128xf32>
    %222 = arith.negf %221 : vector<8x128xf32>
    %223 = math.exp %222 : vector<8x128xf32>
    %cst_64 = arith.constant 1.000000e+00 : f32
    %224 = vector.broadcast %cst_64 : f32 to vector<8x128xf32>
    %225 = arith.addf %224, %223 : vector<8x128xf32>
    %226 = arith.divf %224, %225 : vector<8x128xf32>
    %227 = math.tanh %221 : vector<8x128xf32>
    %228 = vector.extract_strided_slice %226 {offsets = [0, 0], sizes = [8, 32], strides = [1, 1]} : vector<8x128xf32> to vector<8x32xf32>
    %229 = vector.extract_strided_slice %226 {offsets = [0, 32], sizes = [8, 32], strides = [1, 1]} : vector<8x128xf32> to vector<8x32xf32>
    %230 = vector.extract_strided_slice %227 {offsets = [0, 64], sizes = [8, 32], strides = [1, 1]} : vector<8x128xf32> to vector<8x32xf32>
    %231 = vector.extract_strided_slice %226 {offsets = [0, 96], sizes = [8, 32], strides = [1, 1]} : vector<8x128xf32> to vector<8x32xf32>
    %232 = arith.mulf %229, %213 : vector<8x32xf32>
    %233 = arith.mulf %228, %230 : vector<8x32xf32>
    %234 = arith.addf %232, %233 : vector<8x32xf32>
    %235 = math.tanh %234 : vector<8x32xf32>
    %236 = arith.mulf %231, %235 : vector<8x32xf32>
    %237 = arith.index_cast %c2_i32_62 : i32 to index
    %c0_65 = arith.constant 0 : index
    %c0_66 = arith.constant 0 : index
    %238 = vector.load %arg12[%237, %c0_65, %c0_66] : memref<8x8x32xf32, #tpu.memory_space<vmem>>, vector<1x8x32xf32>
    %239 = vector.shape_cast %238 : vector<1x8x32xf32> to vector<8x32xf32>
    %240 = vector.shape_cast %236 : vector<8x32xf32> to vector<1x8x32xf32>
    tpu.vector_store %arg12[%237, %c0_65, %c0_66], %240 {strides = array<i32>} : memref<8x8x32xf32, #tpu.memory_space<vmem>>, vector<1x8x32xf32>,
    %c3_i32_67 = arith.constant 3 : i32
    %cst_68 = arith.constant dense<0.000000e+00> : vector<8x128xf32>
    %241 = tpu.matmul %236, %1, %cst_68 {dimension_numbers = #tpu.dot_dimension_numbers<[1], [0], [0], [1], [0, 0, 1, 1], [], []>} : vector<8x32xf32>, vector<32x128xf32>, vector<8x128xf32> -> vector<8x128xf32>
    %242 = arith.addf %177, %241 : vector<8x128xf32>
    %243 = arith.negf %242 : vector<8x128xf32>
    %244 = math.exp %243 : vector<8x128xf32>
    %cst_69 = arith.constant 1.000000e+00 : f32
    %245 = vector.broadcast %cst_69 : f32 to vector<8x128xf32>
    %246 = arith.addf %245, %244 : vector<8x128xf32>
    %247 = arith.divf %245, %246 : vector<8x128xf32>
    %248 = math.tanh %242 : vector<8x128xf32>
    %249 = vector.extract_strided_slice %247 {offsets = [0, 0], sizes = [8, 32], strides = [1, 1]} : vector<8x128xf32> to vector<8x32xf32>
    %250 = vector.extract_strided_slice %247 {offsets = [0, 32], sizes = [8, 32], strides = [1, 1]} : vector<8x128xf32> to vector<8x32xf32>
    %251 = vector.extract_strided_slice %248 {offsets = [0, 64], sizes = [8, 32], strides = [1, 1]} : vector<8x128xf32> to vector<8x32xf32>
    %252 = vector.extract_strided_slice %247 {offsets = [0, 96], sizes = [8, 32], strides = [1, 1]} : vector<8x128xf32> to vector<8x32xf32>
    %253 = arith.mulf %250, %234 : vector<8x32xf32>
    %254 = arith.mulf %249, %251 : vector<8x32xf32>
    %255 = arith.addf %253, %254 : vector<8x32xf32>
    %256 = math.tanh %255 : vector<8x32xf32>
    %257 = arith.mulf %252, %256 : vector<8x32xf32>
    %258 = arith.index_cast %c3_i32_67 : i32 to index
    %c0_70 = arith.constant 0 : index
    %c0_71 = arith.constant 0 : index
    %259 = vector.load %arg12[%258, %c0_70, %c0_71] : memref<8x8x32xf32, #tpu.memory_space<vmem>>, vector<1x8x32xf32>
    %260 = vector.shape_cast %259 : vector<1x8x32xf32> to vector<8x32xf32>
    %261 = vector.shape_cast %257 : vector<8x32xf32> to vector<1x8x32xf32>
    tpu.vector_store %arg12[%258, %c0_70, %c0_71], %261 {strides = array<i32>} : memref<8x8x32xf32, #tpu.memory_space<vmem>>, vector<1x8x32xf32>,
    %c4_i32_72 = arith.constant 4 : i32
    %cst_73 = arith.constant dense<0.000000e+00> : vector<8x128xf32>
    %262 = tpu.matmul %257, %1, %cst_73 {dimension_numbers = #tpu.dot_dimension_numbers<[1], [0], [0], [1], [0, 0, 1, 1], [], []>} : vector<8x32xf32>, vector<32x128xf32>, vector<8x128xf32> -> vector<8x128xf32>
    %263 = arith.addf %177, %262 : vector<8x128xf32>
    %264 = arith.negf %263 : vector<8x128xf32>
    %265 = math.exp %264 : vector<8x128xf32>
    %cst_74 = arith.constant 1.000000e+00 : f32
    %266 = vector.broadcast %cst_74 : f32 to vector<8x128xf32>
    %267 = arith.addf %266, %265 : vector<8x128xf32>
    %268 = arith.divf %266, %267 : vector<8x128xf32>
    %269 = math.tanh %263 : vector<8x128xf32>
    %270 = vector.extract_strided_slice %268 {offsets = [0, 0], sizes = [8, 32], strides = [1, 1]} : vector<8x128xf32> to vector<8x32xf32>
    %271 = vector.extract_strided_slice %268 {offsets = [0, 32], sizes = [8, 32], strides = [1, 1]} : vector<8x128xf32> to vector<8x32xf32>
    %272 = vector.extract_strided_slice %269 {offsets = [0, 64], sizes = [8, 32], strides = [1, 1]} : vector<8x128xf32> to vector<8x32xf32>
    %273 = vector.extract_strided_slice %268 {offsets = [0, 96], sizes = [8, 32], strides = [1, 1]} : vector<8x128xf32> to vector<8x32xf32>
    %274 = arith.mulf %271, %255 : vector<8x32xf32>
    %275 = arith.mulf %270, %272 : vector<8x32xf32>
    %276 = arith.addf %274, %275 : vector<8x32xf32>
    %277 = math.tanh %276 : vector<8x32xf32>
    %278 = arith.mulf %273, %277 : vector<8x32xf32>
    %279 = arith.index_cast %c4_i32_72 : i32 to index
    %c0_75 = arith.constant 0 : index
    %c0_76 = arith.constant 0 : index
    %280 = vector.load %arg12[%279, %c0_75, %c0_76] : memref<8x8x32xf32, #tpu.memory_space<vmem>>, vector<1x8x32xf32>
    %281 = vector.shape_cast %280 : vector<1x8x32xf32> to vector<8x32xf32>
    %282 = vector.shape_cast %278 : vector<8x32xf32> to vector<1x8x32xf32>
    tpu.vector_store %arg12[%279, %c0_75, %c0_76], %282 {strides = array<i32>} : memref<8x8x32xf32, #tpu.memory_space<vmem>>, vector<1x8x32xf32>,
    %c5_i32_77 = arith.constant 5 : i32
    %cst_78 = arith.constant dense<0.000000e+00> : vector<8x128xf32>
    %283 = tpu.matmul %278, %1, %cst_78 {dimension_numbers = #tpu.dot_dimension_numbers<[1], [0], [0], [1], [0, 0, 1, 1], [], []>} : vector<8x32xf32>, vector<32x128xf32>, vector<8x128xf32> -> vector<8x128xf32>
    %284 = arith.addf %177, %283 : vector<8x128xf32>
    %285 = arith.negf %284 : vector<8x128xf32>
    %286 = math.exp %285 : vector<8x128xf32>
    %cst_79 = arith.constant 1.000000e+00 : f32
    %287 = vector.broadcast %cst_79 : f32 to vector<8x128xf32>
    %288 = arith.addf %287, %286 : vector<8x128xf32>
    %289 = arith.divf %287, %288 : vector<8x128xf32>
    %290 = math.tanh %284 : vector<8x128xf32>
    %291 = vector.extract_strided_slice %289 {offsets = [0, 0], sizes = [8, 32], strides = [1, 1]} : vector<8x128xf32> to vector<8x32xf32>
    %292 = vector.extract_strided_slice %289 {offsets = [0, 32], sizes = [8, 32], strides = [1, 1]} : vector<8x128xf32> to vector<8x32xf32>
    %293 = vector.extract_strided_slice %290 {offsets = [0, 64], sizes = [8, 32], strides = [1, 1]} : vector<8x128xf32> to vector<8x32xf32>
    %294 = vector.extract_strided_slice %289 {offsets = [0, 96], sizes = [8, 32], strides = [1, 1]} : vector<8x128xf32> to vector<8x32xf32>
    %295 = arith.mulf %292, %276 : vector<8x32xf32>
    %296 = arith.mulf %291, %293 : vector<8x32xf32>
    %297 = arith.addf %295, %296 : vector<8x32xf32>
    %298 = math.tanh %297 : vector<8x32xf32>
    %299 = arith.mulf %294, %298 : vector<8x32xf32>
    %300 = arith.index_cast %c5_i32_77 : i32 to index
    %c0_80 = arith.constant 0 : index
    %c0_81 = arith.constant 0 : index
    %301 = vector.load %arg12[%300, %c0_80, %c0_81] : memref<8x8x32xf32, #tpu.memory_space<vmem>>, vector<1x8x32xf32>
    %302 = vector.shape_cast %301 : vector<1x8x32xf32> to vector<8x32xf32>
    %303 = vector.shape_cast %299 : vector<8x32xf32> to vector<1x8x32xf32>
    tpu.vector_store %arg12[%300, %c0_80, %c0_81], %303 {strides = array<i32>} : memref<8x8x32xf32, #tpu.memory_space<vmem>>, vector<1x8x32xf32>,
    %c6_i32_82 = arith.constant 6 : i32
    %cst_83 = arith.constant dense<0.000000e+00> : vector<8x128xf32>
    %304 = tpu.matmul %299, %1, %cst_83 {dimension_numbers = #tpu.dot_dimension_numbers<[1], [0], [0], [1], [0, 0, 1, 1], [], []>} : vector<8x32xf32>, vector<32x128xf32>, vector<8x128xf32> -> vector<8x128xf32>
    %305 = arith.addf %177, %304 : vector<8x128xf32>
    %306 = arith.negf %305 : vector<8x128xf32>
    %307 = math.exp %306 : vector<8x128xf32>
    %cst_84 = arith.constant 1.000000e+00 : f32
    %308 = vector.broadcast %cst_84 : f32 to vector<8x128xf32>
    %309 = arith.addf %308, %307 : vector<8x128xf32>
    %310 = arith.divf %308, %309 : vector<8x128xf32>
    %311 = math.tanh %305 : vector<8x128xf32>
    %312 = vector.extract_strided_slice %310 {offsets = [0, 0], sizes = [8, 32], strides = [1, 1]} : vector<8x128xf32> to vector<8x32xf32>
    %313 = vector.extract_strided_slice %310 {offsets = [0, 32], sizes = [8, 32], strides = [1, 1]} : vector<8x128xf32> to vector<8x32xf32>
    %314 = vector.extract_strided_slice %311 {offsets = [0, 64], sizes = [8, 32], strides = [1, 1]} : vector<8x128xf32> to vector<8x32xf32>
    %315 = vector.extract_strided_slice %310 {offsets = [0, 96], sizes = [8, 32], strides = [1, 1]} : vector<8x128xf32> to vector<8x32xf32>
    %316 = arith.mulf %313, %297 : vector<8x32xf32>
    %317 = arith.mulf %312, %314 : vector<8x32xf32>
    %318 = arith.addf %316, %317 : vector<8x32xf32>
    %319 = math.tanh %318 : vector<8x32xf32>
    %320 = arith.mulf %315, %319 : vector<8x32xf32>
    %321 = arith.index_cast %c6_i32_82 : i32 to index
    %c0_85 = arith.constant 0 : index
    %c0_86 = arith.constant 0 : index
    %322 = vector.load %arg12[%321, %c0_85, %c0_86] : memref<8x8x32xf32, #tpu.memory_space<vmem>>, vector<1x8x32xf32>
    %323 = vector.shape_cast %322 : vector<1x8x32xf32> to vector<8x32xf32>
    %324 = vector.shape_cast %320 : vector<8x32xf32> to vector<1x8x32xf32>
    tpu.vector_store %arg12[%321, %c0_85, %c0_86], %324 {strides = array<i32>} : memref<8x8x32xf32, #tpu.memory_space<vmem>>, vector<1x8x32xf32>,
    %c7_i32_87 = arith.constant 7 : i32
    %cst_88 = arith.constant dense<0.000000e+00> : vector<8x128xf32>
    %325 = tpu.matmul %320, %1, %cst_88 {dimension_numbers = #tpu.dot_dimension_numbers<[1], [0], [0], [1], [0, 0, 1, 1], [], []>} : vector<8x32xf32>, vector<32x128xf32>, vector<8x128xf32> -> vector<8x128xf32>
    %326 = arith.addf %177, %325 : vector<8x128xf32>
    %327 = arith.negf %326 : vector<8x128xf32>
    %328 = math.exp %327 : vector<8x128xf32>
    %cst_89 = arith.constant 1.000000e+00 : f32
    %329 = vector.broadcast %cst_89 : f32 to vector<8x128xf32>
    %330 = arith.addf %329, %328 : vector<8x128xf32>
    %331 = arith.divf %329, %330 : vector<8x128xf32>
    %332 = math.tanh %326 : vector<8x128xf32>
    %333 = vector.extract_strided_slice %331 {offsets = [0, 0], sizes = [8, 32], strides = [1, 1]} : vector<8x128xf32> to vector<8x32xf32>
    %334 = vector.extract_strided_slice %331 {offsets = [0, 32], sizes = [8, 32], strides = [1, 1]} : vector<8x128xf32> to vector<8x32xf32>
    %335 = vector.extract_strided_slice %332 {offsets = [0, 64], sizes = [8, 32], strides = [1, 1]} : vector<8x128xf32> to vector<8x32xf32>
    %336 = vector.extract_strided_slice %331 {offsets = [0, 96], sizes = [8, 32], strides = [1, 1]} : vector<8x128xf32> to vector<8x32xf32>
    %337 = arith.mulf %334, %318 : vector<8x32xf32>
    %338 = arith.mulf %333, %335 : vector<8x32xf32>
    %339 = arith.addf %337, %338 : vector<8x32xf32>
    %340 = math.tanh %339 : vector<8x32xf32>
    %341 = arith.mulf %336, %340 : vector<8x32xf32>
    %342 = arith.index_cast %c7_i32_87 : i32 to index
    %c0_90 = arith.constant 0 : index
    %c0_91 = arith.constant 0 : index
    %343 = vector.load %arg12[%342, %c0_90, %c0_91] : memref<8x8x32xf32, #tpu.memory_space<vmem>>, vector<1x8x32xf32>
    %344 = vector.shape_cast %343 : vector<1x8x32xf32> to vector<8x32xf32>
    %345 = vector.shape_cast %341 : vector<8x32xf32> to vector<1x8x32xf32>
    tpu.vector_store %arg12[%342, %c0_90, %c0_91], %345 {strides = array<i32>} : memref<8x8x32xf32, #tpu.memory_space<vmem>>, vector<1x8x32xf32>,
    %c8_i32_92 = arith.constant 8 : i32
    %c0_93 = arith.constant 0 : index
    %c0_94 = arith.constant 0 : index
    %c0_95 = arith.constant 0 : index
    %346 = vector.load %arg12[%c0_93, %c0_94, %c0_95] : memref<8x8x32xf32, #tpu.memory_space<vmem>>, vector<8x8x32xf32>
    %347 = vector.shape_cast %346 : vector<8x8x32xf32> to vector<64x32xf32>
    %c0_96 = arith.constant 0 : index
    %c0_97 = arith.constant 0 : index
    %348 = vector.load %arg8[%c0_96, %c0_97] : memref<32x1xf32, #tpu.memory_space<vmem>>, vector<32x1xf32>
    %cst_98 = arith.constant dense<0.000000e+00> : vector<64x1xf32>
    %349 = tpu.matmul %347, %348, %cst_98 {dimension_numbers = #tpu.dot_dimension_numbers<[1], [0], [0], [1], [0, 0, 1, 1], [], []>} : vector<64x32xf32>, vector<32x1xf32>, vector<64x1xf32> -> vector<64x1xf32>
    %c0_99 = arith.constant 0 : index
    %c0_100 = arith.constant 0 : index
    %350 = vector.load %arg9[%c0_99, %c0_100] : memref<1x1xf32, #tpu.memory_space<vmem>>, vector<1x1xf32>
    %351 = vector.extract %350[0, 0] : f32 from vector<1x1xf32>
    %352 = vector.broadcast %351 : f32 to vector<64x1xf32>
    %353 = arith.addf %349, %352 : vector<64x1xf32>
    %354 = vector.shape_cast %353 : vector<64x1xf32> to vector<8x8x1xf32>
    %c0_101 = arith.constant 0 : index
    %c0_102 = arith.constant 0 : index
    %c0_103 = arith.constant 0 : index
    %355 = vector.load %arg10[%c0_101, %c0_102, %c0_103] : memref<8x8x1xf32, #tpu.memory_space<vmem>>, vector<8x8x1xf32>
    tpu.vector_store %arg10[%c0_101, %c0_102, %c0_103], %354 {strides = array<i32>} : memref<8x8x1xf32, #tpu.memory_space<vmem>>, vector<8x8x1xf32>,
    return
  }
  func.func @transform_0(%arg0: i32) -> (i32, i32, i32) {
    %c0_i32 = arith.constant 0 : i32
    %c0_i32_0 = arith.constant 0 : i32
    %c0_i32_1 = arith.constant 0 : i32
    %c0_i32_2 = arith.constant 0 : i32
    return %c0_i32, %c0_i32_0, %c0_i32_1 : i32, i32, i32
  }
  func.func @transform_1(%arg0: i32) -> (i32, i32) {
    %c0_i32 = arith.constant 0 : i32
    %c0_i32_0 = arith.constant 0 : i32
    %c0_i32_1 = arith.constant 0 : i32
    return %c0_i32, %c0_i32_0 : i32, i32
  }
  func.func @transform_2(%arg0: i32) -> (i32, i32) {
    %c0_i32 = arith.constant 0 : i32
    %c0_i32_0 = arith.constant 0 : i32
    %c0_i32_1 = arith.constant 0 : i32
    return %c0_i32, %c0_i32_0 : i32, i32
  }
  func.func @transform_3(%arg0: i32) -> (i32, i32) {
    %c0_i32 = arith.constant 0 : i32
    %c0_i32_0 = arith.constant 0 : i32
    %c0_i32_1 = arith.constant 0 : i32
    return %c0_i32, %c0_i32_0 : i32, i32
  }
  func.func @transform_4(%arg0: i32) -> (i32, i32) {
    %c0_i32 = arith.constant 0 : i32
    %c0_i32_0 = arith.constant 0 : i32
    %c0_i32_1 = arith.constant 0 : i32
    return %c0_i32, %c0_i32_0 : i32, i32
  }
  func.func @transform_5(%arg0: i32) -> (i32, i32) {
    %c0_i32 = arith.constant 0 : i32
    %c0_i32_0 = arith.constant 0 : i32
    %c0_i32_1 = arith.constant 0 : i32
    return %c0_i32, %c0_i32_0 : i32, i32
  }
  func.func @transform_6(%arg0: i32) -> (i32, i32) {
    %c0_i32 = arith.constant 0 : i32
    %c0_i32_0 = arith.constant 0 : i32
    %c0_i32_1 = arith.constant 0 : i32
    return %c0_i32, %c0_i32_0 : i32, i32
  }
  func.func @transform_7(%arg0: i32) -> (i32, i32) {
    %c0_i32 = arith.constant 0 : i32
    %c0_i32_0 = arith.constant 0 : i32
    %c0_i32_1 = arith.constant 0 : i32
    return %c0_i32, %c0_i32_0 : i32, i32
  }
  func.func @transform_8(%arg0: i32) -> (i32, i32) {
    %c0_i32 = arith.constant 0 : i32
    %c0_i32_0 = arith.constant 0 : i32
    %c0_i32_1 = arith.constant 0 : i32
    return %c0_i32, %c0_i32_0 : i32, i32
  }
  func.func @transform_9(%arg0: i32) -> (i32, i32, i32) {
    %c0_i32 = arith.constant 0 : i32
    %c0_i32_0 = arith.constant 0 : i32
    %c0_i32_1 = arith.constant 0 : i32
    %c0_i32_2 = arith.constant 0 : i32
    return %c0_i32, %c0_i32_0, %c0_i32_1 : i32, i32, i32
  }
}

</mosaic_0001>

<bundles_post_ra>
// kernel: tpu_custom_call.1
= control target key start
LH: loop header
LB: loop body
LE: loop exit
PB: predicated region body
PF: predicated region fallthrough
CT: control target
= control target key end

     0   :  { %s1899_s0 = inlined_call_operand.vmem [shape: f32[8,8,4], index: 0, kind: input, shape index: {}]   ;;  %s1900_s1 = inlined_call_operand.hbm [shape: f32[4,128], index: 1, kind: input, shape index: {}]   ;;  %s1901_s2 = inlined_call_operand.vmem [shape: f32[32,128], index: 2, kind: input, shape index: {}]   ;;  %s1902_s3 = inlined_call_operand.vmem [shape: f32[1,128], index: 3, kind: input, shape index: {}]   ;;  %s1903_s4 = inlined_call_operand.vmem [shape: f32[32,128], index: 4, kind: input, shape index: {}]   ;;  %s1904_s5 = inlined_call_operand.vmem [shape: f32[32,128], index: 5, kind: input, shape index: {}]   ;;  %s1905_s6 = inlined_call_operand.vmem [shape: f32[1,128], index: 6, kind: input, shape index: {}]   ;;  %s1906_s7 = inlined_call_operand.vmem [shape: f32[32,1], index: 7, kind: input, shape index: {}]   ;;  %s1907_s8 = inlined_call_operand.<no memory space> [shape: f32[1,1], index: 8, kind: input, shape index: {}]   ;;  %s1908_s9 = inlined_call_operand.vmem [shape: f32[8,8,1], index: 9, kind: output, shape index: {}]  }
   0x1   :  { %v14_v0 = vstv %s1907_s8 }
   0x2   :  { %15 = vst [vmem:[#allocation4] sm:$0x1] %v14_v0 }
   0x3   :  { %16 = vsyncpa [#allocation6], 0  ;;  %s24_s13 = sshll.u32 %s1900_s1, 4  ;;  %s1535_s14 = smov [#allocation5]   ;;  %s25_s13 = int_to_ptr.hbm [resolvable:$true] %s24_s13 }
   0x4   :  { %s26_s15 = sshll.u32 %s1535_s14, 4  ;;  %s27_s15 = int_to_ptr.vmem [resolvable:$true] %s26_s15 }
   0x5   :  { %29 = dma.hbm_to_vmem [thread:$0]  %s25_s13, 64, %s27_s15, [#allocation6]  }
   0x6   :  { %1533 = dma.done.wait [#allocation6], 64  }
   0x7   :  { %1534 = vsyncadd [#allocation6], 4294967232  ;;  %vm94_vm0 = vcmask 1043456   ;;  %vm69_vm1 = vcmask 31744   ;;  %v51_v1 = vld [vmem:[%s1901_s2 + $0x18] sm:$0xff]  ;;  %v50_v2 = vld [vmem:[%s1901_s2 + $0x10] sm:$0xff] }
   0x8   :  { %v64_v3 = vld [vmem:[#allocation5] sm:$0xf]  ;;  %164 = vmatpush.msra.mxu1 %v51_v1  ;;  %v49_v5 = vld [vmem:[%s1901_s2 + $0x8] sm:$0xff]  ;;  %294 = vmatpush.msra.mxu3 %v51_v1  ;;  %v1536_v7 = vmov 0.0   ;;  %v1615_v8 = vld [vmem:[%s1902_s3] ss:$0 sm:$0xff] }
   0x9   :  { %1317 = vmatpush.msk.msra.mxu0 %vm94_vm0, %v64_v3  ;;  %v56_v4 = vld [vmem:[%s1899_s0] sm:$0xff]  ;;  %424 = vmatpush.msra.mxu2 %v51_v1  ;;  %s1537_s25 = smov 64   ;;  %s1538_s3 = smov 32   ;;  %v57_v33 = vld [vmem:[%s1899_s0 + $0x8] sm:$0xff]  ;;  %v58_v34 = vld [vmem:[%s1899_s0 + $0x10] sm:$0xff]  ;;  %vm148_vm6 = vcmask 261120  }
   0xa   :  { %1318 = vmatmul.msk.f32.vlgmr.msra.gmra.mxu0 %vm69_vm1, %v56_v4  ;;  %165 = vmatpush.msra.mxu1 %v50_v2  ;;  %v48_v6 = vld [vmem:[%s1901_s2] sm:$0xff]  ;;  %v59_v35 = vld [vmem:[%s1899_s0 + $0x18] sm:$0xff]  ;;  %v61_v39 = vld [vmem:[%s1899_s0 + $0x28] sm:$0xff] }
   0xb   :  { %229 = vmatpush.msrb.mxu0 %v51_v1  ;;  %295 = vmatpush.msra.mxu3 %v50_v2  ;;  %v60_v36 = vld [vmem:[%s1899_s0 + $0x20] sm:$0xff]  ;;  %v62_v40 = vld [vmem:[%s1899_s0 + $0x30] sm:$0xff]  ;;  %v63_v41 = vld [vmem:[%s1899_s0 + $0x38] sm:$0xff] }
   0xc   :  { %166 = vmatpush.msra.mxu1 %v49_v5  ;;  %425 = vmatpush.msra.mxu2 %v50_v2 }
   0xd   :  { %230 = vmatpush.msrb.mxu0 %v50_v2  ;;  %296 = vmatpush.msra.mxu3 %v49_v5 }
   0xe   :  { %167 = vmatpush.msra.mxu1 %v48_v6  ;;  %426 = vmatpush.msra.mxu2 %v49_v5 }
   0xf   :  { %231 = vmatpush.msrb.mxu0 %v49_v5  ;;  %168 = vmatmul.f32.vlgmr.msra.gmra.mxu1 %v1536_v7 }
  0x10   :  { %297 = vmatpush.msra.mxu3 %v48_v6  ;;  %359 = vmatpush.msrb.mxu1 %v51_v1 }
  0x11   :  { %232 = vmatpush.msrb.mxu0 %v48_v6  ;;  %427 = vmatpush.msra.mxu2 %v48_v6 }
  0x12   :  { %489 = vmatpush.msrb.mxu3 %v51_v1  ;;  %360 = vmatpush.msrb.mxu1 %v50_v2 }
  0x13   :  { %619 = vmatpush.msrb.mxu2 %v51_v1  ;;  %1319 = vmatmul.msk.f32.gmra.mxu0 %vm69_vm1, %v57_v33 }
  0x14   :  { %490 = vmatpush.msrb.mxu3 %v50_v2  ;;  %361 = vmatpush.msrb.mxu1 %v49_v5 }
  0x15   :  { %620 = vmatpush.msrb.mxu2 %v50_v2 }
  0x16   :  { %491 = vmatpush.msrb.mxu3 %v49_v5  ;;  %362 = vmatpush.msrb.mxu1 %v48_v6 }
  0x17   :  { %621 = vmatpush.msrb.mxu2 %v49_v5 }
  0x18   :  { %492 = vmatpush.msrb.mxu3 %v48_v6  ;;  %554 = vmatpush.msra.mxu1 %v51_v1 }
  0x19   :  { %622 = vmatpush.msrb.mxu2 %v48_v6 }
  0x1a   :  { %555 = vmatpush.msra.mxu1 %v50_v2 }
  0x1b   :  { %1320 = vmatmul.msk.f32.gmra.mxu0 %vm69_vm1, %v58_v34 }
  0x1c   :  { %556 = vmatpush.msra.mxu1 %v49_v5 }
  0x1e   :  { %557 = vmatpush.msra.mxu1 %v48_v6 }
  0x23   :  { %1321 = vmatmul.msk.f32.gmra.mxu0 %vm69_vm1, %v59_v35 }
  0x2b   :  { %1322 = vmatmul.msk.f32.gmra.mxu0 %vm69_vm1, %v60_v36 }
  0x33   :  { %1323 = vmatmul.msk.f32.gmra.mxu0 %vm69_vm1, %v61_v39 }
  0x3b   :  { %1324 = vmatmul.msk.f32.gmra.mxu0 %vm69_vm1, %v62_v40 }
  0x43   :  { %1325 = vmatmul.msk.f32.gmra.mxu0 %vm69_vm1, %v63_v41 }
  0x87   :  { %v115_v9 = vpop.f32.mrf.mxu0 }
  0x88   :  { %v116_v10 = vadd.f32 %v1615_v8, %v115_v9 }
  0x8c   :  { %v169_v11 = vpop.f32.mrf.mxu1 }
  0x8d   :  { %v172_v12 = vadd.f32 %v169_v11, %v116_v10 }
  0x8f   :  { %1381 = vtanh.f32 %v172_v12  ;;  %v1326_v14 = vmul.f32 -1.442695, %v172_v12 }
  0x90   :  { %v118_v43 = vpop.f32.mrf.mxu0 }
  0x91   :  { %1383 = vpow2.f32 %v1326_v14  ;;  %v119_v50 = vadd.f32 %v1615_v8, %v118_v43 }
  0x95   :  { %v1382_v13 = vpop.eup %1381 }
  0x96   :  { %195 = vrot.lane.b32.xlu0 %v1382_v13, %s1537_s25 }
  0x97   :  { %v1384_v15 = vpop.eup %1383 }
  0x98   :  { %v176_v16 = vadd.f32 1.0, %v1384_v15  ;;  %v121_v44 = vpop.f32.mrf.mxu0 }
  0x99   :  { %v122_v14 = vadd.f32 %v1615_v8, %v121_v44 }
  0x9a   :  { %1385 = vrcp.f32 %v176_v16  ;;  %v188_v22 = vand.u32 2147483648, %v176_v16  ;;  %vm182_vm3 = vweird.f32 %v176_v16  ;;  %v186_v23 = vand.u32 2147483647, %v176_v16 }
  0x9c   :  { %v189_v25 = vor.u32 1.1754944e-38, %v188_v22  ;;  %vm187_vm5 = vcmp.eq.f32.partialorder %v186_v23, 8.507059e+37 }
  0xa0   :  { %v1386_v17 = vpop.eup %1385  ;;  %v1651_v45 = vpop.f32.mrf.mxu0 }
  0xa1   :  { %v178_v18 = vmul.f32 %v1386_v17, %v176_v16  ;;  %vm183_vm2 = vweird.f32 %v1386_v17  ;;  %v125_v40 = vadd.f32 %v1615_v8, %v1651_v45 }
  0xa2   :  { %vm184_vm4 = vmor %vm182_vm3, %vm183_vm2 }
  0xa3   :  { %v179_v19 = vsub.f32 1.0, %v178_v18 }
  0xa5   :  { %v180_v20 = vmul.f32 %v1386_v17, %v179_v19 }
  0xa7   :  { %v181_v21 = vadd.f32 %v1386_v17, %v180_v20 }
  0xa8   :  { %v1653_v46 = vpop.f32.mrf.mxu0 }
  0xa9   :  { %v185_v24 = vsel %vm184_vm4, %v1386_v17, %v181_v21 }
  0xaa   :  { %v190_v27 = vsel %vm187_vm5, %v189_v25, %v185_v24 }
  0xab   :  { %v193_v29 = vmul.f32 0.0, %v190_v27 }
  0xb0   :  { %v1655_v47 = vpop.f32.mrf.mxu0 }
  0xb8   :  { %v1657_v48 = vpop.f32.mrf.mxu0 }
  0xc0   :  { %v1659_v49 = vpop.f32.mrf.mxu0 }
 0x108   :  { %v196_v26 = vpop.permute.xlu0 %195 }
 0x109   :  { %v198_v28 = vmul.f32 %v196_v26, %v190_v27 }
 0x10b   :  { %200 = vrot.lane.b32.xlu0 %v198_v28, %s1538_s3 }
 0x17d   :  { %v201_v30 = vpop.permute.xlu0 %200 }
 0x17e   :  { %v203_v31 = vadd.f32 %v201_v30, %v193_v29 }
 0x180   :  { %1387 = vtanh.f32 %v203_v31 }
 0x186   :  { %v1388_v32 = vpop.eup %1387 }
 0x187   :  { %206 = vrot.lane.b32.xlu1 %v1388_v32, %s1537_s25 }
 0x1f9   :  { %v207_v37 = vpop.permute.xlu1 %206 }
 0x1fa   :  { %v209_v38 = vmul.f32 %v207_v37, %v190_v27 }
 0x1fc   :  { %213 = vrot.lane.b32.xlu1 %v209_v38, %s1538_s3 }
 0x26e   :  { %v214_v42 = vpop.permute.xlu1 %213 }
 0x26f   :  { %1327 = vmatmul.msk.f32.vlgmr.msrb.gmra.mxu0 %vm148_vm6, %v214_v42 }
 0x2ec   :  { %v234_v51 = vpop.f32.mrf.mxu0 }
 0x2ed   :  { %v237_v52 = vadd.f32 %v234_v51, %v119_v50 }
 0x2ef   :  { %1389 = vtanh.f32 %v237_v52  ;;  %v1328_v54 = vmul.f32 -1.442695, %v237_v52 }
 0x2f1   :  { %1391 = vpow2.f32 %v1328_v54 }
 0x2f5   :  { %v1390_v53 = vpop.eup %1389 }
 0x2f6   :  { %260 = vrot.lane.b32.xlu2 %v1390_v53, %s1537_s25 }
 0x2f7   :  { %v1392_v55 = vpop.eup %1391 }
 0x2f8   :  { %v241_v56 = vadd.f32 1.0, %v1392_v55 }
 0x2fa   :  { %1393 = vrcp.f32 %v241_v56  ;;  %v253_v62 = vand.u32 2147483648, %v241_v56  ;;  %vm247_vm8 = vweird.f32 %v241_v56  ;;  %v251_v63 = vand.u32 2147483647, %v241_v56 }
 0x2fc   :  { %v254_v1 = vor.u32 1.1754944e-38, %v253_v62  ;;  %vm252_vm10 = vcmp.eq.f32.partialorder %v251_v63, 8.507059e+37 }
 0x300   :  { %v1394_v57 = vpop.eup %1393 }
 0x301   :  { %v243_v58 = vmul.f32 %v1394_v57, %v241_v56  ;;  %vm248_vm7 = vweird.f32 %v1394_v57 }
 0x302   :  { %vm249_vm9 = vmor %vm247_vm8, %vm248_vm7 }
 0x303   :  { %v244_v59 = vsub.f32 1.0, %v243_v58 }
 0x305   :  { %v245_v60 = vmul.f32 %v1394_v57, %v244_v59 }
 0x307   :  { %v246_v61 = vadd.f32 %v1394_v57, %v245_v60 }
 0x309   :  { %v250_v0 = vsel %vm249_vm9, %v1394_v57, %v246_v61 }
 0x30a   :  { %v255_v3 = vsel %vm252_vm10, %v254_v1, %v250_v0 }
 0x30b   :  { %v258_v5 = vmul.f32 %v255_v3, %v203_v31 }
 0x350   :  { %v261_v2 = vpop.permute.xlu2 %260 }
 0x351   :  { %v263_v4 = vmul.f32 %v261_v2, %v255_v3 }
 0x353   :  { %265 = vrot.lane.b32.xlu2 %v263_v4, %s1538_s3 }
 0x3ad   :  { %v266_v6 = vpop.permute.xlu2 %265 }
 0x3ae   :  { %v268_v9 = vadd.f32 %v266_v6, %v258_v5  ;;  %v128_v6 = vadd.f32 %v1615_v8, %v1653_v46 }
 0x3b0   :  { %1395 = vtanh.f32 %v268_v9 }
 0x3b6   :  { %v1396_v10 = vpop.eup %1395 }
 0x3b7   :  { %271 = vrot.lane.b32.xlu0 %v1396_v10, %s1537_s25 }
 0x429   :  { %v272_v11 = vpop.permute.xlu0 %271 }
 0x42a   :  { %v274_v12 = vmul.f32 %v272_v11, %v255_v3 }
 0x42c   :  { %278 = vrot.lane.b32.xlu1 %v274_v12, %s1538_s3 }
 0x49e   :  { %v279_v13 = vpop.permute.xlu1 %278 }
 0x49f   :  { %1329 = vmatmul.msk.f32.vlgmr.msra.gmra.mxu3 %vm148_vm6, %v279_v13 }
 0x522   :  { %v299_v15 = vpop.f32.mrf.mxu3 }
 0x523   :  { %v302_v16 = vadd.f32 %v299_v15, %v122_v14 }
 0x525   :  { %1397 = vtanh.f32 %v302_v16  ;;  %v1330_v18 = vmul.f32 -1.442695, %v302_v16 }
 0x527   :  { %1399 = vpow2.f32 %v1330_v18 }
 0x52b   :  { %v1398_v17 = vpop.eup %1397 }
 0x52c   :  { %325 = vrot.lane.b32.xlu2 %v1398_v17, %s1537_s25 }
 0x52d   :  { %v1400_v19 = vpop.eup %1399 }
 0x52e   :  { %v306_v20 = vadd.f32 1.0, %v1400_v19 }
 0x530   :  { %1401 = vrcp.f32 %v306_v20  ;;  %v318_v26 = vand.u32 2147483648, %v306_v20  ;;  %vm312_vm12 = vweird.f32 %v306_v20  ;;  %v316_v27 = vand.u32 2147483647, %v306_v20 }
 0x532   :  { %v319_v29 = vor.u32 1.1754944e-38, %v318_v26  ;;  %vm317_vm14 = vcmp.eq.f32.partialorder %v316_v27, 8.507059e+37 }
 0x536   :  { %v1402_v21 = vpop.eup %1401 }
 0x537   :  { %v308_v22 = vmul.f32 %v1402_v21, %v306_v20  ;;  %vm313_vm11 = vweird.f32 %v1402_v21 }
 0x538   :  { %vm314_vm13 = vmor %vm312_vm12, %vm313_vm11 }
 0x539   :  { %v309_v23 = vsub.f32 1.0, %v308_v22 }
 0x53b   :  { %v310_v24 = vmul.f32 %v1402_v21, %v309_v23 }
 0x53d   :  { %v311_v25 = vadd.f32 %v1402_v21, %v310_v24 }
 0x53f   :  { %v315_v28 = vsel %vm314_vm13, %v1402_v21, %v311_v25 }
 0x540   :  { %v320_v31 = vsel %vm317_vm14, %v319_v29, %v315_v28 }
 0x541   :  { %v323_v33 = vmul.f32 %v320_v31, %v268_v9 }
 0x586   :  { %v326_v30 = vpop.permute.xlu2 %325 }
 0x587   :  { %v328_v32 = vmul.f32 %v326_v30, %v320_v31 }
 0x589   :  { %330 = vrot.lane.b32.xlu0 %v328_v32, %s1538_s3 }
 0x5fb   :  { %v331_v34 = vpop.permute.xlu0 %330 }
 0x5fc   :  { %v333_v35 = vadd.f32 %v331_v34, %v323_v33  ;;  %v131_v33 = vadd.f32 %v1615_v8, %v1655_v47 }
 0x5fe   :  { %1403 = vtanh.f32 %v333_v35 }
 0x604   :  { %v1404_v36 = vpop.eup %1403 }
 0x605   :  { %336 = vrot.lane.b32.xlu1 %v1404_v36, %s1537_s25 }
 0x677   :  { %v337_v37 = vpop.permute.xlu1 %336 }
 0x678   :  { %v339_v38 = vmul.f32 %v337_v37, %v320_v31 }
 0x67a   :  { %343 = vrot.lane.b32.xlu2 %v339_v38, %s1538_s3 }
 0x6d4   :  { %v344_v39 = vpop.permute.xlu2 %343 }
 0x6d5   :  { %1331 = vmatmul.msk.f32.vlgmr.msrb.gmra.mxu1 %vm148_vm6, %v344_v39 }
 0x752   :  { %v364_v41 = vpop.f32.mrf.mxu1 }
 0x753   :  { %v367_v42 = vadd.f32 %v364_v41, %v125_v40 }
 0x755   :  { %1405 = vtanh.f32 %v367_v42  ;;  %v1332_v44 = vmul.f32 -1.442695, %v367_v42 }
 0x757   :  { %1407 = vpow2.f32 %v1332_v44 }
 0x75b   :  { %v1406_v43 = vpop.eup %1405 }
 0x75c   :  { %390 = vrot.lane.b32.xlu0 %v1406_v43, %s1537_s25 }
 0x75d   :  { %v1408_v50 = vpop.eup %1407 }
 0x75e   :  { %v371_v51 = vadd.f32 1.0, %v1408_v50 }
 0x760   :  { %1409 = vrcp.f32 %v371_v51  ;;  %v383_v57 = vand.u32 2147483648, %v371_v51  ;;  %vm377_vm0 = vweird.f32 %v371_v51  ;;  %v381_v45 = vand.u32 2147483647, %v371_v51 }
 0x762   :  { %v384_v59 = vor.u32 1.1754944e-38, %v383_v57  ;;  %vm382_vm2 = vcmp.eq.f32.partialorder %v381_v45, 8.507059e+37 }
 0x766   :  { %v1410_v52 = vpop.eup %1409 }
 0x767   :  { %v373_v53 = vmul.f32 %v1410_v52, %v371_v51  ;;  %vm378_vm15 = vweird.f32 %v1410_v52 }
 0x768   :  { %vm379_vm1 = vmor %vm377_vm0, %vm378_vm15 }
 0x769   :  { %v374_v54 = vsub.f32 1.0, %v373_v53 }
 0x76b   :  { %v375_v55 = vmul.f32 %v1410_v52, %v374_v54 }
 0x76d   :  { %v376_v56 = vadd.f32 %v1410_v52, %v375_v55 }
 0x76f   :  { %v380_v58 = vsel %vm379_vm1, %v1410_v52, %v376_v56 }
 0x770   :  { %v385_v61 = vsel %vm382_vm2, %v384_v59, %v380_v58 }
 0x771   :  { %v388_v63 = vmul.f32 %v385_v61, %v333_v35 }
 0x7ce   :  { %v391_v60 = vpop.permute.xlu0 %390 }
 0x7cf   :  { %v393_v62 = vmul.f32 %v391_v60, %v385_v61 }
 0x7d1   :  { %395 = vrot.lane.b32.xlu1 %v393_v62, %s1538_s3  ;;  %v134_v62 = vadd.f32 %v1615_v8, %v1657_v48 }
 0x843   :  { %v396_v0 = vpop.permute.xlu1 %395 }
 0x844   :  { %v398_v1 = vadd.f32 %v396_v0, %v388_v63 }
 0x846   :  { %1411 = vtanh.f32 %v398_v1 }
 0x84c   :  { %v1412_v2 = vpop.eup %1411 }
 0x84d   :  { %401 = vrot.lane.b32.xlu2 %v1412_v2, %s1537_s25 }
 0x8a7   :  { %v402_v3 = vpop.permute.xlu2 %401 }
 0x8a8   :  { %v404_v4 = vmul.f32 %v402_v3, %v385_v61 }
 0x8aa   :  { %408 = vrot.lane.b32.xlu0 %v404_v4, %s1538_s3 }
 0x91c   :  { %v409_v5 = vpop.permute.xlu0 %408 }
 0x91d   :  { %1333 = vmatmul.msk.f32.vlgmr.msra.gmra.mxu2 %vm148_vm6, %v409_v5 }
 0x9a0   :  { %v429_v9 = vpop.f32.mrf.mxu2 }
 0x9a1   :  { %v432_v10 = vadd.f32 %v429_v9, %v128_v6 }
 0x9a3   :  { %1413 = vtanh.f32 %v432_v10  ;;  %v1334_v12 = vmul.f32 -1.442695, %v432_v10 }
 0x9a5   :  { %1415 = vpow2.f32 %v1334_v12 }
 0x9a9   :  { %v1414_v11 = vpop.eup %1413 }
 0x9aa   :  { %455 = vrot.lane.b32.xlu1 %v1414_v11, %s1537_s25 }
 0x9ab   :  { %v1416_v13 = vpop.eup %1415 }
 0x9ac   :  { %v436_v14 = vadd.f32 1.0, %v1416_v13 }
 0x9ae   :  { %1417 = vrcp.f32 %v436_v14  ;;  %v448_v20 = vand.u32 2147483648, %v436_v14  ;;  %vm442_vm4 = vweird.f32 %v436_v14  ;;  %v446_v46 = vand.u32 2147483647, %v436_v14 }
 0x9b0   :  { %v449_v22 = vor.u32 1.1754944e-38, %v448_v20  ;;  %vm447_vm7 = vcmp.eq.f32.partialorder %v446_v46, 8.507059e+37 }
 0x9b4   :  { %v1418_v15 = vpop.eup %1417 }
 0x9b5   :  { %v438_v16 = vmul.f32 %v1418_v15, %v436_v14  ;;  %vm443_vm3 = vweird.f32 %v1418_v15 }
 0x9b6   :  { %vm444_vm5 = vmor %vm442_vm4, %vm443_vm3 }
 0x9b7   :  { %v439_v17 = vsub.f32 1.0, %v438_v16 }
 0x9b9   :  { %v440_v18 = vmul.f32 %v1418_v15, %v439_v17 }
 0x9bb   :  { %v441_v19 = vadd.f32 %v1418_v15, %v440_v18 }
 0x9bd   :  { %v445_v21 = vsel %vm444_vm5, %v1418_v15, %v441_v19 }
 0x9be   :  { %v450_v24 = vsel %vm447_vm7, %v449_v22, %v445_v21 }
 0x9bf   :  { %v453_v26 = vmul.f32 %v450_v24, %v398_v1 }
 0xa1c   :  { %v456_v23 = vpop.permute.xlu1 %455 }
 0xa1d   :  { %v458_v25 = vmul.f32 %v456_v23, %v450_v24 }
 0xa1f   :  { %460 = vrot.lane.b32.xlu2 %v458_v25, %s1538_s3 }
 0xa79   :  { %v461_v27 = vpop.permute.xlu2 %460 }
 0xa7a   :  { %v463_v28 = vadd.f32 %v461_v27, %v453_v26 }
 0xa7c   :  { %1419 = vtanh.f32 %v463_v28 }
 0xa82   :  { %v1420_v29 = vpop.eup %1419 }
 0xa83   :  { %466 = vrot.lane.b32.xlu0 %v1420_v29, %s1537_s25 }
 0xaf5   :  { %v467_v30 = vpop.permute.xlu0 %466 }
 0xaf6   :  { %v469_v31 = vmul.f32 %v467_v30, %v450_v24  ;;  %v137_v24 = vadd.f32 %v1615_v8, %v1659_v49 }
 0xaf8   :  { %473 = vrot.lane.b32.xlu1 %v469_v31, %s1538_s3 }
 0xb6a   :  { %v474_v32 = vpop.permute.xlu1 %473 }
 0xb6b   :  { %1335 = vmatmul.msk.f32.vlgmr.msrb.gmra.mxu3 %vm148_vm6, %v474_v32 }
 0xbee   :  { %v494_v34 = vpop.f32.mrf.mxu3 }
 0xbef   :  { %v497_v35 = vadd.f32 %v494_v34, %v131_v33 }
 0xbf1   :  { %1421 = vtanh.f32 %v497_v35  ;;  %v1336_v37 = vmul.f32 -1.442695, %v497_v35 }
 0xbf3   :  { %1423 = vpow2.f32 %v1336_v37 }
 0xbf7   :  { %v1422_v36 = vpop.eup %1421 }
 0xbf8   :  { %520 = vrot.lane.b32.xlu2 %v1422_v36, %s1537_s25 }
 0xbf9   :  { %v1424_v38 = vpop.eup %1423 }
 0xbfa   :  { %v501_v39 = vadd.f32 1.0, %v1424_v38 }
 0xbfc   :  { %1425 = vrcp.f32 %v501_v39  ;;  %v513_v50 = vand.u32 2147483648, %v501_v39  ;;  %vm507_vm9 = vweird.f32 %v501_v39  ;;  %v511_v47 = vand.u32 2147483647, %v501_v39 }
 0xbfe   :  { %v514_v52 = vor.u32 1.1754944e-38, %v513_v50  ;;  %vm512_vm11 = vcmp.eq.f32.partialorder %v511_v47, 8.507059e+37  ;;  %v668_v50 = vld [vmem:[%s1903_s4 + $0x18] sm:$0xff]  ;;  %v667_v47 = vld [vmem:[%s1903_s4 + $0x10] sm:$0xff] }
 0xbff   :  { %690 = vmatpush.msra.mxu3 %v668_v50 }
 0xc01   :  { %691 = vmatpush.msra.mxu3 %v667_v47 }
 0xc02   :  { %v1426_v40 = vpop.eup %1425 }
 0xc03   :  { %v503_v41 = vmul.f32 %v1426_v40, %v501_v39  ;;  %vm508_vm8 = vweird.f32 %v1426_v40 }
 0xc04   :  { %vm509_vm10 = vmor %vm507_vm9, %vm508_vm8 }
 0xc05   :  { %v504_v42 = vsub.f32 1.0, %v503_v41 }
 0xc07   :  { %v505_v43 = vmul.f32 %v1426_v40, %v504_v42 }
 0xc09   :  { %v506_v44 = vadd.f32 %v1426_v40, %v505_v43 }
 0xc0b   :  { %v510_v51 = vsel %vm509_vm10, %v1426_v40, %v506_v44 }
 0xc0c   :  { %v515_v54 = vsel %vm512_vm11, %v514_v52, %v510_v51  ;;  %v666_v51 = vld [vmem:[%s1903_s4 + $0x8] sm:$0xff]  ;;  %v665_v52 = vld [vmem:[%s1903_s4] sm:$0xff] }
 0xc0d   :  { %v518_v56 = vmul.f32 %v515_v54, %v463_v28  ;;  %692 = vmatpush.msra.mxu3 %v666_v51 }
 0xc0f   :  { %693 = vmatpush.msra.mxu3 %v665_v52 }
 0xc52   :  { %v521_v53 = vpop.permute.xlu2 %520 }
 0xc53   :  { %v523_v55 = vmul.f32 %v521_v53, %v515_v54 }
 0xc55   :  { %525 = vrot.lane.b32.xlu0 %v523_v55, %s1538_s3  ;;  %v1722_v55 = vld [vmem:[%s1904_s5 + $0x18] sm:$0xff] }
 0xc56   :  { %710 = vmatpush.msrb.mxu1 %v1722_v55  ;;  %775 = vmatpush.msra.mxu2 %v1722_v55 }
 0xc57   :  { %841 = vmatpush.msrb.mxu3 %v1722_v55 }
 0xcc7   :  { %v526_v57 = vpop.permute.xlu0 %525 }
 0xcc8   :  { %v528_v45 = vadd.f32 %v526_v57, %v518_v56  ;;  %v1727_v56 = vld [vmem:[%s1904_s5 + $0x10] sm:$0xff]  ;;  %v1734_v57 = vld [vmem:[%s1904_s5 + $0x8] sm:$0xff] }
 0xcc9   :  { %711 = vmatpush.msrb.mxu1 %v1727_v56  ;;  %776 = vmatpush.msra.mxu2 %v1727_v56 }
 0xcca   :  { %1427 = vtanh.f32 %v528_v45  ;;  %842 = vmatpush.msrb.mxu3 %v1727_v56 }
 0xccb   :  { %712 = vmatpush.msrb.mxu1 %v1734_v57  ;;  %777 = vmatpush.msra.mxu2 %v1734_v57 }
 0xccc   :  { %843 = vmatpush.msrb.mxu3 %v1734_v57 }
 0xcd0   :  { %v1428_v58 = vpop.eup %1427 }
 0xcd1   :  { %531 = vrot.lane.b32.xlu1 %v1428_v58, %s1537_s25  ;;  %v1380_v58 = vld [vmem:[%s1905_s6] ss:$0 sm:$0xff] }
 0xd43   :  { %v532_v59 = vpop.permute.xlu1 %531 }
 0xd44   :  { %v534_v60 = vmul.f32 %v532_v59, %v515_v54 }
 0xd46   :  { %538 = vrot.lane.b32.xlu2 %v534_v60, %s1538_s3 }
 0xda0   :  { %v539_v61 = vpop.permute.xlu2 %538 }
 0xda1   :  { %1337 = vmatmul.msk.f32.vlgmr.msra.gmra.mxu1 %vm148_vm6, %v539_v61 }
 0xe1e   :  { %v559_v63 = vpop.f32.mrf.mxu1 }
 0xe1f   :  { %v562_v0 = vadd.f32 %v559_v63, %v134_v62 }
 0xe21   :  { %1429 = vtanh.f32 %v562_v0  ;;  %v1338_v2 = vmul.f32 -1.442695, %v562_v0 }
 0xe23   :  { %1431 = vpow2.f32 %v1338_v2 }
 0xe27   :  { %v1430_v1 = vpop.eup %1429 }
 0xe28   :  { %585 = vrot.lane.b32.xlu0 %v1430_v1, %s1537_s25 }
 0xe29   :  { %v1432_v3 = vpop.eup %1431 }
 0xe2a   :  { %v566_v4 = vadd.f32 1.0, %v1432_v3 }
 0xe2c   :  { %1433 = vrcp.f32 %v566_v4  ;;  %v578_v12 = vand.u32 2147483648, %v566_v4  ;;  %vm572_vm13 = vweird.f32 %v566_v4  ;;  %v576_v48 = vand.u32 2147483647, %v566_v4 }
 0xe2e   :  { %v579_v14 = vor.u32 1.1754944e-38, %v578_v12  ;;  %vm577_vm15 = vcmp.eq.f32.partialorder %v576_v48, 8.507059e+37 }
 0xe32   :  { %v1434_v5 = vpop.eup %1433 }
 0xe33   :  { %v568_v6 = vmul.f32 %v1434_v5, %v566_v4  ;;  %vm573_vm12 = vweird.f32 %v1434_v5 }
 0xe34   :  { %vm574_vm14 = vmor %vm572_vm13, %vm573_vm12 }
 0xe35   :  { %v569_v9 = vsub.f32 1.0, %v568_v6 }
 0xe37   :  { %v570_v10 = vmul.f32 %v1434_v5, %v569_v9 }
 0xe39   :  { %v571_v11 = vadd.f32 %v1434_v5, %v570_v10 }
 0xe3b   :  { %v575_v13 = vsel %vm574_vm14, %v1434_v5, %v571_v11 }
 0xe3c   :  { %v580_v16 = vsel %vm577_vm15, %v579_v14, %v575_v13 }
 0xe3d   :  { %v583_v18 = vmul.f32 %v580_v16, %v528_v45  ;;  %v1742_v45 = vld [vmem:[%s1904_s5] sm:$0xff] }
 0xe3e   :  { %713 = vmatpush.msrb.mxu1 %v1742_v45  ;;  %778 = vmatpush.msra.mxu2 %v1742_v45 }
 0xe3f   :  { %714 = vmatmul.f32.vlgmr.msrb.gmra.mxu1 %v1536_v7  ;;  %844 = vmatpush.msrb.mxu3 %v1742_v45 }
 0xe40   :  { %907 = vmatpush.msra.mxu1 %v1722_v55 }
 0xe42   :  { %908 = vmatpush.msra.mxu1 %v1727_v56 }
 0xe44   :  { %909 = vmatpush.msra.mxu1 %v1734_v57 }
 0xe46   :  { %910 = vmatpush.msra.mxu1 %v1742_v45 }
 0xe48   :  { %1105 = vmatpush.msrb.mxu1 %v1722_v55 }
 0xe4a   :  { %1106 = vmatpush.msrb.mxu1 %v1727_v56 }
 0xe4c   :  { %1107 = vmatpush.msrb.mxu1 %v1734_v57 }
 0xe4e   :  { %1108 = vmatpush.msrb.mxu1 %v1742_v45 }
 0xe9a   :  { %v586_v15 = vpop.permute.xlu0 %585 }
 0xe9b   :  { %v588_v17 = vmul.f32 %v586_v15, %v580_v16 }
 0xe9d   :  { %590 = vrot.lane.b32.xlu1 %v588_v17, %s1538_s3 }
 0xebc   :  { %v715_v60 = vpop.f32.mrf.mxu1 }
 0xf0f   :  { %v591_v19 = vpop.permute.xlu1 %590 }
 0xf10   :  { %v593_v20 = vadd.f32 %v591_v19, %v583_v18 }
 0xf12   :  { %1435 = vtanh.f32 %v593_v20 }
 0xf18   :  { %v1436_v46 = vpop.eup %1435 }
 0xf19   :  { %596 = vrot.lane.b32.xlu2 %v1436_v46, %s1537_s25 }
 0xf73   :  { %v597_v21 = vpop.permute.xlu2 %596 }
 0xf74   :  { %v599_v22 = vmul.f32 %v597_v21, %v580_v16 }
 0xf76   :  { %603 = vrot.lane.b32.xlu0 %v599_v22, %s1538_s3 }
 0xfe8   :  { %v604_v23 = vpop.permute.xlu0 %603 }
 0xfe9   :  { %1339 = vmatmul.msk.f32.vlgmr.msrb.gmra.mxu2 %vm148_vm6, %v604_v23 }
 0xfea   :  { %973 = vmatpush.msrb.mxu2 %v1722_v55 }
 0xfec   :  { %974 = vmatpush.msrb.mxu2 %v1727_v56 }
 0xfee   :  { %975 = vmatpush.msrb.mxu2 %v1734_v57 }
 0xff0   :  { %976 = vmatpush.msrb.mxu2 %v1742_v45 }
0x106c   :  { %v624_v25 = vpop.f32.mrf.mxu2 }
0x106d   :  { %v627_v26 = vadd.f32 %v624_v25, %v137_v24 }
0x106f   :  { %1437 = vtanh.f32 %v627_v26  ;;  %v1340_v28 = vmul.f32 -1.442695, %v627_v26 }
0x1071   :  { %1439 = vpow2.f32 %v1340_v28 }
0x1075   :  { %v1438_v27 = vpop.eup %1437 }
0x1076   :  { %650 = vrot.lane.b32.xlu1 %v1438_v27, %s1537_s25 }
0x1077   :  { %v1440_v29 = vpop.eup %1439 }
0x1078   :  { %v631_v30 = vadd.f32 1.0, %v1440_v29 }
0x107a   :  { %1441 = vrcp.f32 %v631_v30  ;;  %v643_v36 = vand.u32 2147483648, %v631_v30  ;;  %vm637_vm1 = vweird.f32 %v631_v30  ;;  %v641_v8 = vand.u32 2147483647, %v631_v30 }
0x107c   :  { %v644_v37 = vor.u32 1.1754944e-38, %v643_v36  ;;  %vm642_vm3 = vcmp.eq.f32.partialorder %v641_v8, 8.507059e+37 }
0x1080   :  { %v1442_v31 = vpop.eup %1441 }
0x1081   :  { %v633_v32 = vmul.f32 %v1442_v31, %v631_v30  ;;  %vm638_vm0 = vweird.f32 %v1442_v31 }
0x1082   :  { %vm639_vm2 = vmor %vm637_vm1, %vm638_vm0 }
0x1083   :  { %v634_v33 = vsub.f32 1.0, %v633_v32 }
0x1085   :  { %v635_v34 = vmul.f32 %v1442_v31, %v634_v33 }
0x1087   :  { %v636_v35 = vadd.f32 %v1442_v31, %v635_v34 }
0x1089   :  { %v640_v49 = vsel %vm639_vm2, %v1442_v31, %v636_v35 }
0x108a   :  { %v645_v39 = vsel %vm642_vm3, %v644_v37, %v640_v49 }
0x108b   :  { %v648_v41 = vmul.f32 %v645_v39, %v593_v20 }
0x10e8   :  { %v651_v38 = vpop.permute.xlu1 %650 }
0x10e9   :  { %v653_v40 = vmul.f32 %v651_v38, %v645_v39 }
0x10eb   :  { %655 = vrot.lane.b32.xlu2 %v653_v40, %s1538_s3 }
0x1145   :  { %v656_v42 = vpop.permute.xlu2 %655 }
0x1146   :  { %v658_v43 = vadd.f32 %v656_v42, %v648_v41 }
0x1148   :  { %1443 = vtanh.f32 %v658_v43 }
0x114e   :  { %v1444_v44 = vpop.eup %1443 }
0x114f   :  { %661 = vrot.lane.b32.xlu0 %v1444_v44, %s1537_s25 }
0x11c1   :  { %v662_v53 = vpop.permute.xlu0 %661 }
0x11c2   :  { %v664_v54 = vmul.f32 %v662_v53, %v645_v39 }
0x11c4   :  { %674 = vrot.lane.b32.xlu1 %v664_v54, %s1538_s3 }
0x1236   :  { %v675_v7 = vpop.permute.xlu1 %674 }
0x1237   :  { %1341 = vmatmul.msk.f32.vlgmr.msra.gmra.mxu3 %vm148_vm6, %v675_v7 }
0x1238   :  { %1039 = vmatpush.msra.mxu3 %v1722_v55 }
0x123a   :  { %1040 = vmatpush.msra.mxu3 %v1727_v56 }
0x123c   :  { %1041 = vmatpush.msra.mxu3 %v1734_v57 }
0x123e   :  { %1042 = vmatpush.msra.mxu3 %v1742_v45 }
0x12ba   :  { %v695_v59 = vpop.f32.mrf.mxu3 }
0x12bb   :  { %v1772_v61 = vadd.f32 %v1380_v58, %v695_v59 }
0x12bd   :  { %v718_v62 = vadd.f32 %v715_v60, %v1772_v61 }
0x12bf   :  { %1445 = vtanh.f32 %v718_v62  ;;  %v1342_v0 = vmul.f32 -1.442695, %v718_v62 }
0x12c1   :  { %1447 = vpow2.f32 %v1342_v0 }
0x12c5   :  { %v1446_v63 = vpop.eup %1445 }
0x12c6   :  { %741 = vrot.lane.b32.xlu2 %v1446_v63, %s1537_s25 }
0x12c7   :  { %v1448_v1 = vpop.eup %1447 }
0x12c8   :  { %v722_v2 = vadd.f32 1.0, %v1448_v1 }
0x12ca   :  { %1449 = vrcp.f32 %v722_v2  ;;  %v734_v10 = vand.u32 2147483648, %v722_v2  ;;  %vm728_vm5 = vweird.f32 %v722_v2  ;;  %v732_v11 = vand.u32 2147483647, %v722_v2 }
0x12cc   :  { %v735_v48 = vor.u32 1.1754944e-38, %v734_v10  ;;  %vm733_vm8 = vcmp.eq.f32.partialorder %v732_v11, 8.507059e+37 }
0x12d0   :  { %v1450_v3 = vpop.eup %1449 }
0x12d1   :  { %v724_v4 = vmul.f32 %v1450_v3, %v722_v2  ;;  %vm729_vm4 = vweird.f32 %v1450_v3 }
0x12d2   :  { %vm730_vm7 = vmor %vm728_vm5, %vm729_vm4 }
0x12d3   :  { %v725_v5 = vsub.f32 1.0, %v724_v4 }
0x12d5   :  { %v726_v6 = vmul.f32 %v1450_v3, %v725_v5 }
0x12d7   :  { %v727_v9 = vadd.f32 %v1450_v3, %v726_v6 }
0x12d9   :  { %v731_v12 = vsel %vm730_vm7, %v1450_v3, %v727_v9 }
0x12da   :  { %v736_v14 = vsel %vm733_vm8, %v735_v48, %v731_v12 }
0x12db   :  { %v739_v16 = vmul.f32 0.0, %v736_v14 }
0x1320   :  { %v742_v13 = vpop.permute.xlu2 %741 }
0x1321   :  { %v744_v15 = vmul.f32 %v742_v13, %v736_v14 }
0x1323   :  { %746 = vrot.lane.b32.xlu0 %v744_v15, %s1538_s3 }
0x1395   :  { %v747_v17 = vpop.permute.xlu0 %746 }
0x1396   :  { %v749_v18 = vadd.f32 %v747_v17, %v739_v16 }
0x1398   :  { %1451 = vtanh.f32 %v749_v18 }
0x139e   :  { %v1452_v19 = vpop.eup %1451 }
0x139f   :  { %752 = vrot.lane.b32.xlu1 %v1452_v19, %s1537_s25 }
0x1411   :  { %v753_v20 = vpop.permute.xlu1 %752 }
0x1412   :  { %v755_v46 = vmul.f32 %v753_v20, %v736_v14 }
0x1414   :  { %757 = vrot.lane.b32.xlu2 %v755_v46, %s1538_s3 }
0x146e   :  { %v758_v21 = vpop.permute.xlu2 %757 }
0x146f   :  { %760 = vst.msk [vmem:[#allocation3] sm:$0xff] %vm148_vm6, %v758_v21  ;;  %1343 = vmatmul.msk.f32.vlgmr.msra.gmra.mxu2 %vm148_vm6, %v758_v21 }
0x1470   :  { %1171 = vmatpush.msra.mxu2 %v1722_v55 }
0x1472   :  { %1172 = vmatpush.msra.mxu2 %v1727_v56 }
0x1474   :  { %1173 = vmatpush.msra.mxu2 %v1734_v57 }
0x1476   :  { %1174 = vmatpush.msra.mxu2 %v1742_v45 }
0x14f2   :  { %v780_v22 = vpop.f32.mrf.mxu2 }
0x14f3   :  { %v783_v23 = vadd.f32 %v780_v22, %v1772_v61 }
0x14f5   :  { %1453 = vtanh.f32 %v783_v23  ;;  %v1344_v25 = vmul.f32 -1.442695, %v783_v23 }
0x14f7   :  { %1455 = vpow2.f32 %v1344_v25 }
0x14fb   :  { %v1454_v24 = vpop.eup %1453 }
0x14fc   :  { %806 = vrot.lane.b32.xlu0 %v1454_v24, %s1537_s25 }
0x14fd   :  { %v1456_v26 = vpop.eup %1455 }
0x14fe   :  { %v787_v27 = vadd.f32 1.0, %v1456_v26 }
0x1500   :  { %1457 = vrcp.f32 %v787_v27  ;;  %v799_v33 = vand.u32 2147483648, %v787_v27  ;;  %vm793_vm10 = vweird.f32 %v787_v27  ;;  %v797_v34 = vand.u32 2147483647, %v787_v27 }
0x1502   :  { %v800_v36 = vor.u32 1.1754944e-38, %v799_v33  ;;  %vm798_vm12 = vcmp.eq.f32.partialorder %v797_v34, 8.507059e+37 }
0x1506   :  { %v1458_v28 = vpop.eup %1457 }
0x1507   :  { %v789_v29 = vmul.f32 %v1458_v28, %v787_v27  ;;  %vm794_vm9 = vweird.f32 %v1458_v28 }
0x1508   :  { %vm795_vm11 = vmor %vm793_vm10, %vm794_vm9 }
0x1509   :  { %v790_v30 = vsub.f32 1.0, %v789_v29 }
0x150b   :  { %v791_v31 = vmul.f32 %v1458_v28, %v790_v30 }
0x150d   :  { %v792_v32 = vadd.f32 %v1458_v28, %v791_v31 }
0x150f   :  { %v796_v35 = vsel %vm795_vm11, %v1458_v28, %v792_v32 }
0x1510   :  { %v801_v49 = vsel %vm798_vm12, %v800_v36, %v796_v35 }
0x1511   :  { %v804_v38 = vmul.f32 %v801_v49, %v749_v18 }
0x156e   :  { %v807_v8 = vpop.permute.xlu0 %806 }
0x156f   :  { %v809_v37 = vmul.f32 %v807_v8, %v801_v49 }
0x1571   :  { %811 = vrot.lane.b32.xlu1 %v809_v37, %s1538_s3 }
0x15e3   :  { %v812_v39 = vpop.permute.xlu1 %811 }
0x15e4   :  { %v814_v40 = vadd.f32 %v812_v39, %v804_v38 }
0x15e6   :  { %1459 = vtanh.f32 %v814_v40 }
0x15ec   :  { %v1460_v41 = vpop.eup %1459 }
0x15ed   :  { %817 = vrot.lane.b32.xlu2 %v1460_v41, %s1537_s25 }
0x1647   :  { %v818_v42 = vpop.permute.xlu2 %817 }
0x1648   :  { %v820_v43 = vmul.f32 %v818_v42, %v801_v49 }
0x164a   :  { %822 = vrot.lane.b32.xlu0 %v820_v43, %s1538_s3 }
0x16bc   :  { %v823_v44 = vpop.permute.xlu0 %822 }
0x16bd   :  { %826 = vst.msk [vmem:[#allocation3 + $0x8] sm:$0xff] %vm148_vm6, %v823_v44  ;;  %1345 = vmatmul.msk.f32.vlgmr.msrb.gmra.mxu3 %vm148_vm6, %v823_v44 }
0x1740   :  { %v846_v50 = vpop.f32.mrf.mxu3 }
0x1741   :  { %v849_v47 = vadd.f32 %v846_v50, %v1772_v61 }
0x1743   :  { %1461 = vtanh.f32 %v849_v47  ;;  %v1346_v52 = vmul.f32 -1.442695, %v849_v47 }
0x1745   :  { %1463 = vpow2.f32 %v1346_v52 }
0x1749   :  { %v1462_v51 = vpop.eup %1461 }
0x174a   :  { %872 = vrot.lane.b32.xlu1 %v1462_v51, %s1537_s25 }
0x174b   :  { %v1464_v53 = vpop.eup %1463 }
0x174c   :  { %v853_v54 = vadd.f32 1.0, %v1464_v53 }
0x174e   :  { %1465 = vrcp.f32 %v853_v54  ;;  %v865_v58 = vand.u32 2147483648, %v853_v54  ;;  %vm859_vm14 = vweird.f32 %v853_v54  ;;  %v863_v59 = vand.u32 2147483647, %v853_v54 }
0x1750   :  { %v866_v62 = vor.u32 1.1754944e-38, %v865_v58  ;;  %vm864_vm0 = vcmp.eq.f32.partialorder %v863_v59, 8.507059e+37 }
0x1754   :  { %v1466_v55 = vpop.eup %1465 }
0x1755   :  { %v855_v56 = vmul.f32 %v1466_v55, %v853_v54  ;;  %vm860_vm13 = vweird.f32 %v1466_v55 }
0x1756   :  { %vm861_vm15 = vmor %vm859_vm14, %vm860_vm13  ;;  %vm1303_vm14 = vcmask 7168  }
0x1757   :  { %v856_v57 = vsub.f32 1.0, %v855_v56 }
0x1759   :  { %v857_v45 = vmul.f32 %v1466_v55, %v856_v57 }
0x175b   :  { %v858_v7 = vadd.f32 %v1466_v55, %v857_v45 }
0x175d   :  { %v862_v60 = vsel %vm861_vm15, %v1466_v55, %v858_v7 }
0x175e   :  { %v867_v0 = vsel %vm864_vm0, %v866_v62, %v862_v60 }
0x175f   :  { %v870_v2 = vmul.f32 %v867_v0, %v814_v40 }
0x17bc   :  { %v873_v63 = vpop.permute.xlu1 %872 }
0x17bd   :  { %v875_v1 = vmul.f32 %v873_v63, %v867_v0 }
0x17bf   :  { %877 = vrot.lane.b32.xlu2 %v875_v1, %s1538_s3 }
0x1819   :  { %v878_v3 = vpop.permute.xlu2 %877 }
0x181a   :  { %v880_v4 = vadd.f32 %v878_v3, %v870_v2 }
0x181c   :  { %1467 = vtanh.f32 %v880_v4 }
0x1822   :  { %v1468_v5 = vpop.eup %1467 }
0x1823   :  { %883 = vrot.lane.b32.xlu0 %v1468_v5, %s1537_s25 }
0x1895   :  { %v884_v6 = vpop.permute.xlu0 %883 }
0x1896   :  { %v886_v9 = vmul.f32 %v884_v6, %v867_v0 }
0x1898   :  { %888 = vrot.lane.b32.xlu1 %v886_v9, %s1538_s3 }
0x190a   :  { %v889_v10 = vpop.permute.xlu1 %888 }
0x190b   :  { %892 = vst.msk [vmem:[#allocation3 + $0x10] sm:$0xff] %vm148_vm6, %v889_v10  ;;  %1347 = vmatmul.msk.f32.vlgmr.msra.gmra.mxu1 %vm148_vm6, %v889_v10 }
0x1988   :  { %v912_v11 = vpop.f32.mrf.mxu1 }
0x1989   :  { %v915_v12 = vadd.f32 %v912_v11, %v1772_v61 }
0x198b   :  { %1469 = vtanh.f32 %v915_v12  ;;  %v1348_v13 = vmul.f32 -1.442695, %v915_v12 }
0x198d   :  { %1471 = vpow2.f32 %v1348_v13 }
0x1991   :  { %v1470_v48 = vpop.eup %1469 }
0x1992   :  { %938 = vrot.lane.b32.xlu2 %v1470_v48, %s1537_s25 }
0x1993   :  { %v1472_v14 = vpop.eup %1471 }
0x1994   :  { %v919_v15 = vadd.f32 1.0, %v1472_v14 }
0x1996   :  { %1473 = vrcp.f32 %v919_v15  ;;  %v931_v46 = vand.u32 2147483648, %v919_v15  ;;  %vm925_vm2 = vweird.f32 %v919_v15  ;;  %v929_v21 = vand.u32 2147483647, %v919_v15 }
0x1998   :  { %v932_v23 = vor.u32 1.1754944e-38, %v931_v46  ;;  %vm930_vm4 = vcmp.eq.f32.partialorder %v929_v21, 8.507059e+37  ;;  %v1234_v46 = vld [vmem:[%s1906_s7 + $0x18] sm:$0xff]  ;;  %v1233_v21 = vld [vmem:[%s1906_s7 + $0x10] sm:$0xff] }
0x1999   :  { %1274 = vmatpush.msra.mxu1 %v1234_v46  ;;  %1366 = vmatpush.msrb.mxu3 %v1234_v46 }
0x199b   :  { %1275 = vmatpush.msra.mxu1 %v1233_v21  ;;  %1368 = vmatpush.msrb.mxu3 %v1233_v21 }
0x199c   :  { %v1474_v16 = vpop.eup %1473 }
0x199d   :  { %v921_v17 = vmul.f32 %v1474_v16, %v919_v15  ;;  %vm926_vm1 = vweird.f32 %v1474_v16 }
0x199e   :  { %vm927_vm3 = vmor %vm925_vm2, %vm926_vm1 }
0x199f   :  { %v922_v18 = vsub.f32 1.0, %v921_v17 }
0x19a1   :  { %v923_v19 = vmul.f32 %v1474_v16, %v922_v18 }
0x19a3   :  { %v924_v20 = vadd.f32 %v1474_v16, %v923_v19 }
0x19a5   :  { %v928_v22 = vsel %vm927_vm3, %v1474_v16, %v924_v20 }
0x19a6   :  { %v933_v25 = vsel %vm930_vm4, %v932_v23, %v928_v22  ;;  %v1232_v22 = vld [vmem:[%s1906_s7 + $0x8] sm:$0xff]  ;;  %v1231_v23 = vld [vmem:[%s1906_s7] sm:$0xff] }
0x19a7   :  { %v936_v27 = vmul.f32 %v933_v25, %v880_v4  ;;  %1276 = vmatpush.msra.mxu1 %v1232_v22  ;;  %1370 = vmatpush.msrb.mxu3 %v1232_v22 }
0x19a9   :  { %1277 = vmatpush.msra.mxu1 %v1231_v23  ;;  %1372 = vmatpush.msrb.mxu3 %v1231_v23 }
0x19ec   :  { %v939_v24 = vpop.permute.xlu2 %938 }
0x19ed   :  { %v941_v26 = vmul.f32 %v939_v24, %v933_v25  ;;  %v1235_v24 = vld [vmem:[#allocation4] sm:$0x1] }
0x19ee   :  { %1373 = vpush %v1235_v24 }
0x19ef   :  { %943 = vrot.lane.b32.xlu0 %v941_v26, %s1538_s3  ;;  %v1223_v26 = vld [vmem:[#allocation3] sm:$0xff] }
0x1a1f   :  { %s1374_s7 = spop %1373 }
0x1a61   :  { %v944_v28 = vpop.permute.xlu0 %943 }
0x1a62   :  { %v946_v29 = vadd.f32 %v944_v28, %v936_v27  ;;  %v1224_v28 = vld [vmem:[#allocation3 + $0x8] sm:$0xff] }
0x1a64   :  { %1475 = vtanh.f32 %v946_v29 }
0x1a6a   :  { %v1476_v30 = vpop.eup %1475 }
0x1a6b   :  { %949 = vrot.lane.b32.xlu1 %v1476_v30, %s1537_s25 }
0x1add   :  { %v950_v31 = vpop.permute.xlu1 %949 }
0x1ade   :  { %v952_v32 = vmul.f32 %v950_v31, %v933_v25  ;;  %v1839_v31 = vstv %s1374_s7 }
0x1ae0   :  { %954 = vrot.lane.b32.xlu2 %v952_v32, %s1538_s3 }
0x1b3a   :  { %v955_v33 = vpop.permute.xlu2 %954 }
0x1b3b   :  { %958 = vst.msk [vmem:[#allocation3 + $0x18] sm:$0xff] %vm148_vm6, %v955_v33  ;;  %1349 = vmatmul.msk.f32.vlgmr.msrb.gmra.mxu2 %vm148_vm6, %v955_v33 }
0x1b3c   :  { %1365 = vmatpush.msrb.mxu2 %v1234_v46 }
0x1b3e   :  { %1367 = vmatpush.msrb.mxu2 %v1233_v21 }
0x1b40   :  { %1369 = vmatpush.msrb.mxu2 %v1232_v22 }
0x1b42   :  { %1371 = vmatpush.msrb.mxu2 %v1231_v23 }
0x1bbe   :  { %v978_v34 = vpop.f32.mrf.mxu2 }
0x1bbf   :  { %v981_v35 = vadd.f32 %v978_v34, %v1772_v61 }
0x1bc1   :  { %1477 = vtanh.f32 %v981_v35  ;;  %v1350_v8 = vmul.f32 -1.442695, %v981_v35 }
0x1bc3   :  { %1479 = vpow2.f32 %v1350_v8 }
0x1bc7   :  { %v1478_v36 = vpop.eup %1477 }
0x1bc8   :  { %1004 = vrot.lane.b32.xlu0 %v1478_v36, %s1537_s25 }
0x1bc9   :  { %v1480_v49 = vpop.eup %1479 }
0x1bca   :  { %v985_v37 = vadd.f32 1.0, %v1480_v49 }
0x1bcc   :  { %1481 = vrcp.f32 %v985_v37  ;;  %v997_v43 = vand.u32 2147483648, %v985_v37  ;;  %vm991_vm7 = vweird.f32 %v985_v37  ;;  %v995_v44 = vand.u32 2147483647, %v985_v37 }
0x1bce   :  { %v998_v47 = vor.u32 1.1754944e-38, %v997_v43  ;;  %vm996_vm9 = vcmp.eq.f32.partialorder %v995_v44, 8.507059e+37 }
0x1bd2   :  { %v1482_v38 = vpop.eup %1481 }
0x1bd3   :  { %v987_v39 = vmul.f32 %v1482_v38, %v985_v37  ;;  %vm992_vm5 = vweird.f32 %v1482_v38 }
0x1bd4   :  { %vm993_vm8 = vmor %vm991_vm7, %vm992_vm5 }
0x1bd5   :  { %v988_v40 = vsub.f32 1.0, %v987_v39 }
0x1bd7   :  { %v989_v41 = vmul.f32 %v1482_v38, %v988_v40 }
0x1bd9   :  { %v990_v42 = vadd.f32 %v1482_v38, %v989_v41 }
0x1bdb   :  { %v994_v50 = vsel %vm993_vm8, %v1482_v38, %v990_v42 }
0x1bdc   :  { %v999_v52 = vsel %vm996_vm9, %v998_v47, %v994_v50 }
0x1bdd   :  { %v1002_v54 = vmul.f32 %v999_v52, %v946_v29 }
0x1c3a   :  { %v1005_v51 = vpop.permute.xlu0 %1004 }
0x1c3b   :  { %v1007_v53 = vmul.f32 %v1005_v51, %v999_v52 }
0x1c3d   :  { %1009 = vrot.lane.b32.xlu1 %v1007_v53, %s1538_s3 }
0x1caf   :  { %v1010_v55 = vpop.permute.xlu1 %1009 }
0x1cb0   :  { %v1012_v56 = vadd.f32 %v1010_v55, %v1002_v54 }
0x1cb2   :  { %1483 = vtanh.f32 %v1012_v56 }
0x1cb8   :  { %v1484_v57 = vpop.eup %1483 }
0x1cb9   :  { %1015 = vrot.lane.b32.xlu2 %v1484_v57, %s1537_s25 }
0x1d13   :  { %v1016_v45 = vpop.permute.xlu2 %1015 }
0x1d14   :  { %v1018_v7 = vmul.f32 %v1016_v45, %v999_v52 }
0x1d16   :  { %1020 = vrot.lane.b32.xlu0 %v1018_v7, %s1538_s3 }
0x1d88   :  { %v1021_v58 = vpop.permute.xlu0 %1020 }
0x1d89   :  { %1024 = vst.msk [vmem:[#allocation3 + $0x20] sm:$0xff] %vm148_vm6, %v1021_v58  ;;  %1351 = vmatmul.msk.f32.vlgmr.msra.gmra.mxu3 %vm148_vm6, %v1021_v58 }
0x1e0c   :  { %v1044_v59 = vpop.f32.mrf.mxu3 }
0x1e0d   :  { %v1047_v60 = vadd.f32 %v1044_v59, %v1772_v61 }
0x1e0f   :  { %1485 = vtanh.f32 %v1047_v60  ;;  %v1352_v63 = vmul.f32 -1.442695, %v1047_v60 }
0x1e11   :  { %1487 = vpow2.f32 %v1352_v63 }
0x1e15   :  { %v1486_v62 = vpop.eup %1485 }
0x1e16   :  { %1070 = vrot.lane.b32.xlu1 %v1486_v62, %s1537_s25  ;;  %v1225_v62 = vld [vmem:[#allocation3 + $0x10] sm:$0xff] }
0x1e17   :  { %v1488_v0 = vpop.eup %1487 }
0x1e18   :  { %v1051_v1 = vadd.f32 1.0, %v1488_v0  ;;  %v1226_v0 = vld [vmem:[#allocation3 + $0x18] sm:$0xff] }
0x1e1a   :  { %1489 = vrcp.f32 %v1051_v1  ;;  %v1063_v9 = vand.u32 2147483648, %v1051_v1  ;;  %vm1057_vm11 = vweird.f32 %v1051_v1  ;;  %v1061_v10 = vand.u32 2147483647, %v1051_v1 }
0x1e1c   :  { %v1064_v12 = vor.u32 1.1754944e-38, %v1063_v9  ;;  %vm1062_vm13 = vcmp.eq.f32.partialorder %v1061_v10, 8.507059e+37 }
0x1e20   :  { %v1490_v2 = vpop.eup %1489 }
0x1e21   :  { %v1053_v3 = vmul.f32 %v1490_v2, %v1051_v1  ;;  %vm1058_vm10 = vweird.f32 %v1490_v2  ;;  %v1227_v1 = vld [vmem:[#allocation3 + $0x20] sm:$0xff] }
0x1e22   :  { %vm1059_vm12 = vmor %vm1057_vm11, %vm1058_vm10 }
0x1e23   :  { %v1054_v4 = vsub.f32 1.0, %v1053_v3 }
0x1e25   :  { %v1055_v5 = vmul.f32 %v1490_v2, %v1054_v4 }
0x1e27   :  { %v1056_v6 = vadd.f32 %v1490_v2, %v1055_v5 }
0x1e29   :  { %v1060_v11 = vsel %vm1059_vm12, %v1490_v2, %v1056_v6 }
0x1e2a   :  { %v1065_v13 = vsel %vm1062_vm13, %v1064_v12, %v1060_v11 }
0x1e2b   :  { %v1068_v15 = vmul.f32 %v1065_v13, %v1012_v56 }
0x1e88   :  { %v1071_v48 = vpop.permute.xlu1 %1070 }
0x1e89   :  { %v1073_v14 = vmul.f32 %v1071_v48, %v1065_v13 }
0x1e8b   :  { %1075 = vrot.lane.b32.xlu2 %v1073_v14, %s1538_s3 }
0x1ee5   :  { %v1076_v16 = vpop.permute.xlu2 %1075 }
0x1ee6   :  { %v1816_v17 = vadd.f32 %v1076_v16, %v1068_v15 }
0x1ee8   :  { %1491 = vtanh.f32 %v1816_v17 }
0x1eee   :  { %v1492_v18 = vpop.eup %1491 }
0x1eef   :  { %1081 = vrot.lane.b32.xlu0 %v1492_v18, %s1537_s25 }
0x1f61   :  { %v1082_v19 = vpop.permute.xlu0 %1081 }
0x1f62   :  { %v1084_v20 = vmul.f32 %v1082_v19, %v1065_v13 }
0x1f64   :  { %1086 = vrot.lane.b32.xlu1 %v1084_v20, %s1538_s3 }
0x1fd6   :  { %v1087_v25 = vpop.permute.xlu1 %1086 }
0x1fd7   :  { %1090 = vst.msk [vmem:[#allocation3 + $0x28] sm:$0xff] %vm148_vm6, %v1087_v25  ;;  %1353 = vmatmul.msk.f32.vlgmr.msrb.gmra.mxu1 %vm148_vm6, %v1087_v25 }
0x1fde   :  { %v1228_v27 = vld [vmem:[#allocation3 + $0x28] sm:$0xff] }
0x1fdf   :  { %1357 = vmatmul.msk.f32.vlgmr.msra.gmra.mxu1 %vm148_vm6, %v1223_v26  ;;  %1362 = vmatmul.msk.f32.vlgmr.msrb.gmra.mxu3 %vm148_vm6, %v1228_v27 }
0x1fe7   :  { %1358 = vmatmul.msk.f32.gmra.mxu1 %vm148_vm6, %v1224_v28 }
0x2054   :  { %v1110_v29 = vpop.f32.mrf.mxu1 }
0x2055   :  { %v1113_v30 = vadd.f32 %v1110_v29, %v1772_v61 }
0x2057   :  { %1493 = vtanh.f32 %v1113_v30  ;;  %v1354_v37 = vmul.f32 -1.442695, %v1113_v30 }
0x2059   :  { %1495 = vpow2.f32 %v1354_v37 }
0x205c   :  { %v1279_v32 = vpop.f32.mrf.mxu1 }
0x205d   :  { %v1494_v33 = vpop.eup %1493  ;;  %v1280_v34 = vadd.f32 %v1279_v32, %v1839_v31 }
0x205e   :  { %1136 = vrot.lane.b32.xlu2 %v1494_v33, %s1537_s25 }
0x205f   :  { %1304 = vst.msk [vmem:[%s1908_s9] sm:$0xff] %vm1303_vm14, %v1280_v34  ;;  %v1496_v38 = vpop.eup %1495 }
0x2060   :  { %v1117_v39 = vadd.f32 1.0, %v1496_v38 }
0x2062   :  { %v1294_v35 = vpop.f32.mrf.mxu3  ;;  %1497 = vrcp.f32 %v1117_v39  ;;  %v1129_v50 = vand.u32 2147483648, %v1117_v39  ;;  %vm1123_vm0 = vweird.f32 %v1117_v39  ;;  %v1127_v47 = vand.u32 2147483647, %v1117_v39 }
0x2063   :  { %v1295_v36 = vadd.f32 %v1294_v35, %v1839_v31 }
0x2064   :  { %v1282_v8 = vpop.f32.mrf.mxu1  ;;  %v1130_v52 = vor.u32 1.1754944e-38, %v1129_v50  ;;  %vm1128_vm2 = vcmp.eq.f32.partialorder %v1127_v47, 8.507059e+37 }
0x2065   :  { %1309 = vst.msk [vmem:[%s1908_s9 + $0x28] sm:$0xff] %vm1303_vm14, %v1295_v36  ;;  %v1283_v49 = vadd.f32 %v1282_v8, %v1839_v31 }
0x2067   :  { %1305 = vst.msk [vmem:[%s1908_s9 + $0x8] sm:$0xff] %vm1303_vm14, %v1283_v49 }
0x2068   :  { %v1498_v40 = vpop.eup %1497 }
0x2069   :  { %v1119_v41 = vmul.f32 %v1498_v40, %v1117_v39  ;;  %vm1124_vm15 = vweird.f32 %v1498_v40 }
0x206a   :  { %vm1125_vm1 = vmor %vm1123_vm0, %vm1124_vm15 }
0x206b   :  { %v1120_v42 = vsub.f32 1.0, %v1119_v41 }
0x206d   :  { %v1121_v43 = vmul.f32 %v1498_v40, %v1120_v42 }
0x206f   :  { %v1122_v44 = vadd.f32 %v1498_v40, %v1121_v43 }
0x2071   :  { %v1126_v51 = vsel %vm1125_vm1, %v1498_v40, %v1122_v44 }
0x2072   :  { %v1131_v54 = vsel %vm1128_vm2, %v1130_v52, %v1126_v51 }
0x2073   :  { %v1134_v56 = vmul.f32 %v1131_v54, %v1816_v17 }
0x20b8   :  { %v1137_v53 = vpop.permute.xlu2 %1136 }
0x20b9   :  { %v1139_v55 = vmul.f32 %v1137_v53, %v1131_v54 }
0x20bb   :  { %1141 = vrot.lane.b32.xlu0 %v1139_v55, %s1538_s3 }
0x212d   :  { %v1142_v57 = vpop.permute.xlu0 %1141 }
0x212e   :  { %v1144_v45 = vadd.f32 %v1142_v57, %v1134_v56 }
0x2130   :  { %1499 = vtanh.f32 %v1144_v45 }
0x2136   :  { %v1500_v7 = vpop.eup %1499 }
0x2137   :  { %1147 = vrot.lane.b32.xlu1 %v1500_v7, %s1537_s25 }
0x21a9   :  { %v1148_v58 = vpop.permute.xlu1 %1147 }
0x21aa   :  { %v1150_v59 = vmul.f32 %v1148_v58, %v1131_v54 }
0x21ac   :  { %1152 = vrot.lane.b32.xlu2 %v1150_v59, %s1538_s3 }
0x2206   :  { %v1153_v60 = vpop.permute.xlu2 %1152 }
0x2207   :  { %1156 = vst.msk [vmem:[#allocation3 + $0x30] sm:$0xff] %vm148_vm6, %v1153_v60  ;;  %1355 = vmatmul.msk.f32.vlgmr.msra.gmra.mxu2 %vm148_vm6, %v1153_v60 }
0x220e   :  { %v1229_v63 = vld [vmem:[#allocation3 + $0x30] sm:$0xff] }
0x220f   :  { %1359 = vmatmul.msk.f32.vlgmr.msrb.gmra.mxu2 %vm148_vm6, %v1225_v62  ;;  %1363 = vmatmul.msk.f32.gmra.mxu3 %vm148_vm6, %v1229_v63 }
0x2217   :  { %1360 = vmatmul.msk.f32.gmra.mxu2 %vm148_vm6, %v1226_v0 }
0x221f   :  { %1361 = vmatmul.msk.f32.gmra.mxu2 %vm148_vm6, %v1227_v1 }
0x228a   :  { %v1176_v2 = vpop.f32.mrf.mxu2 }
0x228b   :  { %v1179_v3 = vadd.f32 %v1176_v2, %v1772_v61 }
0x228d   :  { %1501 = vtanh.f32 %v1179_v3  ;;  %v1356_v13 = vmul.f32 -1.442695, %v1179_v3 }
0x228f   :  { %1503 = vpow2.f32 %v1356_v13 }
0x2292   :  { %v1285_v4 = vpop.f32.mrf.mxu2  ;;  %v1297_v5 = vpop.f32.mrf.mxu3 }
0x2293   :  { %v1502_v6 = vpop.eup %1501  ;;  %v1286_v9 = vadd.f32 %v1285_v4, %v1839_v31  ;;  %v1298_v10 = vadd.f32 %v1297_v5, %v1839_v31 }
0x2294   :  { %1202 = vrot.lane.b32.xlu0 %v1502_v6, %s1537_s25 }
0x2295   :  { %1306 = vst.msk [vmem:[%s1908_s9 + $0x10] sm:$0xff] %vm1303_vm14, %v1286_v9  ;;  %v1504_v14 = vpop.eup %1503 }
0x2296   :  { %1310 = vst.msk [vmem:[%s1908_s9 + $0x30] sm:$0xff] %vm1303_vm14, %v1298_v10  ;;  %v1183_v15 = vadd.f32 1.0, %v1504_v14 }
0x2298   :  { %1505 = vrcp.f32 %v1183_v15  ;;  %v1195_v46 = vand.u32 2147483648, %v1183_v15  ;;  %vm1189_vm4 = vweird.f32 %v1183_v15  ;;  %v1193_v21 = vand.u32 2147483647, %v1183_v15 }
0x229a   :  { %v1288_v61 = vpop.f32.mrf.mxu2  ;;  %v1196_v23 = vor.u32 1.1754944e-38, %v1195_v46  ;;  %vm1194_vm7 = vcmp.eq.f32.partialorder %v1193_v21, 8.507059e+37 }
0x229b   :  { %v1289_v11 = vadd.f32 %v1288_v61, %v1839_v31 }
0x229d   :  { %1307 = vst.msk [vmem:[%s1908_s9 + $0x18] sm:$0xff] %vm1303_vm14, %v1289_v11 }
0x229e   :  { %v1506_v16 = vpop.eup %1505 }
0x229f   :  { %v1185_v17 = vmul.f32 %v1506_v16, %v1183_v15  ;;  %vm1190_vm3 = vweird.f32 %v1506_v16 }
0x22a0   :  { %vm1191_vm5 = vmor %vm1189_vm4, %vm1190_vm3 }
0x22a1   :  { %v1186_v18 = vsub.f32 1.0, %v1185_v17 }
0x22a2   :  { %v1291_v12 = vpop.f32.mrf.mxu2 }
0x22a3   :  { %v1292_v48 = vadd.f32 %v1291_v12, %v1839_v31  ;;  %v1187_v19 = vmul.f32 %v1506_v16, %v1186_v18 }
0x22a5   :  { %1308 = vst.msk [vmem:[%s1908_s9 + $0x20] sm:$0xff] %vm1303_vm14, %v1292_v48  ;;  %v1188_v20 = vadd.f32 %v1506_v16, %v1187_v19 }
0x22a7   :  { %v1192_v22 = vsel %vm1191_vm5, %v1506_v16, %v1188_v20 }
0x22a8   :  { %v1197_v25 = vsel %vm1194_vm7, %v1196_v23, %v1192_v22 }
0x22a9   :  { %v1200_v27 = vmul.f32 %v1197_v25, %v1144_v45 }
0x2306   :  { %v1203_v24 = vpop.permute.xlu0 %1202 }
0x2307   :  { %v1205_v26 = vmul.f32 %v1203_v24, %v1197_v25 }
0x2309   :  { %1207 = vrot.lane.b32.xlu1 %v1205_v26, %s1538_s3 }
0x237b   :  { %v1208_v28 = vpop.permute.xlu1 %1207 }
0x237c   :  { %v1210_v29 = vadd.f32 %v1208_v28, %v1200_v27 }
0x237e   :  { %1507 = vtanh.f32 %v1210_v29 }
0x2384   :  { %v1508_v30 = vpop.eup %1507 }
0x2385   :  { %1213 = vrot.lane.b32.xlu2 %v1508_v30, %s1537_s25 }
0x23df   :  { %v1214_v32 = vpop.permute.xlu2 %1213 }
0x23e0   :  { %v1216_v33 = vmul.f32 %v1214_v32, %v1197_v25 }
0x23e2   :  { %1218 = vrot.lane.b32.xlu0 %v1216_v33, %s1538_s3 }
0x2454   :  { %v1219_v34 = vpop.permute.xlu0 %1218 }
0x2455   :  { %1222 = vst.msk [vmem:[#allocation3 + $0x38] sm:$0xff] %vm148_vm6, %v1219_v34 }
0x245c   :  { %v1230_v35 = vld [vmem:[#allocation3 + $0x38] sm:$0xff] }
0x245d   :  { %1364 = vmatmul.msk.f32.gmra.mxu3 %vm148_vm6, %v1230_v35 }
0x24e0   :  { %v1300_v36 = vpop.f32.mrf.mxu3 }
0x24e1   :  { %v1301_v8 = vadd.f32 %v1300_v36, %v1839_v31 }
0x24e3   :  { %1311 = vst.msk [vmem:[%s1908_s9 + $0x38] sm:$0xff] %vm1303_vm14, %v1301_v8 }
0x24e4   :  { %1316 = vsyncpa [#allocation6], 1 }

</bundles_post_ra>
